<compile_context>
chip_gen: v6e
topology: v6e:2x2x1
jax: 0.10.0
libtpu: 0.0.40
codegen_flags: <defaults>
</compile_context>

<pallas_src>
import functools

import jax
import jax.numpy as jnp
from jax import lax
from jax.experimental import pallas as pl
from jax.experimental.pallas import tpu as pltpu


def _round_up(x, m):
    return ((x + m - 1) // m) * m


def _physical_vmem_bytes():
    """Best-effort physical per-core VMEM size (for budget / limit sizing)."""
    try:
        info = pltpu.get_tpu_info()
        cap = getattr(info, "vmem_capacity_bytes", None)
        if cap:
            return int(cap)
    except Exception:
        pass
    try:
        kind = jax.devices()[0].device_kind.lower()
        if "v7" in kind:
            return 64 << 20
        if "v4" in kind or "v5" in kind or "v6" in kind:
            return 128 << 20
    except Exception:
        pass
    return 64 << 20  # conservative default


def _cores_per_chip():
    """2 TensorCores/chip on v7x, 1 on v4/v5e/v6e."""
    try:
        if "v7" in jax.devices()[0].device_kind.lower():
            return 2
    except Exception:
        pass
    return 1


def _choose_hidden_chunk(chp):
    """Hidden-dim chunk width (multiple of 128, <=512) that divides chp."""
    if chp <= 512:
        return chp
    for c in (512, 384, 256, 128):
        if chp % c == 0:
            return c
    return 128  # unreachable: chp is a multiple of 128


def _tile_bytes(tm, c_in, c_out, chunk, x_isz, o_isz, c_isz):
    """Per-grid-step VMEM footprint (excluding resident weights)."""
    return (2 * tm * c_in * x_isz          # x tile, double-buffered (orig dtype)
            + 2 * tm * c_out * o_isz       # out tile, double-buffered
            + tm * c_in * c_isz            # in-kernel bf16 copy of x
            + tm * chunk * (4 + c_isz)     # f32 hidden chunk + bf16 downcast
            + tm * c_out * 4)              # f32 accumulator


def _choose_tm(M, c_in, c_out, chunk, x_isz, o_isz, c_isz,
               weight_bytes, budget, cores):
    """Largest token tile fitting the VMEM budget, with megacore-aware steps."""
    tm = 16
    for cand in (2048, 1024, 512, 256, 128, 64, 32, 16):
        if weight_bytes + _tile_bytes(cand, c_in, c_out, chunk,
                                      x_isz, o_isz, c_isz) <= budget:
            tm = cand
            break
    # Don't allocate a tile (much) bigger than the 8-aligned token count.
    tm = min(tm, max(8, _round_up(M, 8)))
    if cores >= 2:
        # v7x megacore: prefer a grid-step count that splits evenly across the
        # two TensorCores.  On 1-TC chips shrinking tm only adds overhead.
        while tm >= 32 and tm % 16 == 0 and pl.cdiv(M, tm) % cores != 0:
            tm //= 2
    return tm


def prepare_mlp_params(w1, b1, w2, b2, *, compute_dtype=jnp.bfloat16):
    """One-time weight cast + hidden-dim pad (hoist out of the hot path)."""
    c_in, c_hidden = w1.shape
    c_out = w2.shape[1]
    chp = _round_up(c_hidden, 128)
    w1p = jnp.pad(w1.astype(compute_dtype), ((0, 0), (0, chp - c_hidden)))
    w2p = jnp.pad(w2.astype(compute_dtype), ((0, chp - c_hidden), (0, 0)))
    b1p = jnp.pad(b1.astype(jnp.float32), (0, chp - c_hidden)).reshape(1, chp)
    b2p = b2.astype(jnp.float32).reshape(1, c_out)
    return dict(w1=w1p, b1=b1p, w2=w2p, b2=b2p,
                c_in=c_in, c_hidden=c_hidden, c_out=c_out,
                compute_dtype=compute_dtype)


def _make_kernel(compute_dtype, chunk, n_chunks):
    """Returns (kernel, needs_acc_scratch)."""
    if n_chunks == 1:
        def kernel(x_ref, w1_ref, b1_ref, w2_ref, b2_ref, o_ref):
            # fc1 (bf16 MXU, f32 acc) -> +b1 -> tanh-GELU (EUP) -> bf16
            # -> fc2 (bf16 MXU, f32 acc) -> +b2 -> store.  Dropout p=0.0: no-op.
            x = x_ref[...].astype(compute_dtype)          # cast in-kernel
            h = jnp.dot(x, w1_ref[...], preferred_element_type=jnp.float32)
            h = jax.nn.gelu(h + b1_ref[...], approximate=True)
            y = jnp.dot(h.astype(compute_dtype), w2_ref[...],
                        preferred_element_type=jnp.float32)
            o_ref[...] = (y + b2_ref[...]).astype(o_ref.dtype)
        return kernel, False

    def kernel(x_ref, w1_ref, b1_ref, w2_ref, b2_ref, o_ref, acc_ref):
        x = x_ref[...].astype(compute_dtype)              # cast in-kernel, hoisted
        acc_ref[...] = jnp.zeros_like(acc_ref)

        def body(k, carry):
            k0 = pl.multiple_of(k * chunk, chunk)
            h = jnp.dot(x, w1_ref[:, pl.ds(k0, chunk)],
                        preferred_element_type=jnp.float32)
            h = jax.nn.gelu(h + b1_ref[:, pl.ds(k0, chunk)], approximate=True)
            acc_ref[...] += jnp.dot(h.astype(compute_dtype),
                                    w2_ref[pl.ds(k0, chunk), :],
                                    preferred_element_type=jnp.float32)
            return carry

        lax.fori_loop(0, n_chunks, body, 0, unroll=(n_chunks <= 8))
        o_ref[...] = (acc_ref[...] + b2_ref[...]).astype(o_ref.dtype)

    return kernel, True


def mlp_pallas(x, params, *, tm=None, out_dtype=None):
    """x: (..., C_in) -> (..., C_out). Matches Swin Mlp.forward (drop=0.0)."""
    compute_dtype = params["compute_dtype"]
    c_in, c_out = params["c_in"], params["c_out"]
    chp = params["w1"].shape[1]
    assert x.shape[-1] == c_in

    out_dtype = out_dtype or x.dtype
    lead = x.shape[:-1]
    M = 1
    for d in lead:
        M *= d
    x2d = x.reshape(M, c_in)                 # metadata-only reshape, no copy

    chunk = _choose_hidden_chunk(chp)
    n_chunks = chp // chunk

    x_isz = x.dtype.itemsize
    o_isz = jnp.dtype(out_dtype).itemsize
    c_isz = jnp.dtype(compute_dtype).itemsize
    weight_bytes = (c_in * chp + chp * c_out) * c_isz + (chp + c_out) * 4

    phys_vmem = _physical_vmem_bytes()
    cores = _cores_per_chip()
    if tm is None:
        budget = int(phys_vmem * 0.65)       # ~83 MiB on v5e/v6e, ~42 MiB on v7x
        tm = _choose_tm(M, c_in, c_out, chunk, x_isz, o_isz, c_isz,
                        weight_bytes, budget, cores)

    grid = (pl.cdiv(M, tm),)
    vmem_need = weight_bytes + _tile_bytes(tm, c_in, c_out, chunk,
                                           x_isz, o_isz, c_isz)
    vmem_limit = min(max(int(vmem_need * 1.5), 32 << 20), int(phys_vmem * 0.85))
    if vmem_need > vmem_limit:
        vmem_limit = min(int(vmem_need * 1.1), int(phys_vmem * 0.95))

    kernel, needs_acc = _make_kernel(compute_dtype, chunk, n_chunks)
    scratch = [pltpu.VMEM((tm, c_out), jnp.float32)] if needs_acc else []

    resident = dict(pipeline_mode=pl.Buffered(1))   # weights stay resident

    cost = pl.CostEstimate(
        flops=2 * M * (c_in * chp + chp * c_out),
        transcendentals=M * chp,
        bytes_accessed=M * c_in * x_isz + M * c_out * o_isz + weight_bytes,
    )

    out = pl.pallas_call(
        kernel,
        out_shape=jax.ShapeDtypeStruct((M, c_out), out_dtype),
        grid_spec=pltpu.PrefetchScalarGridSpec(
            num_scalar_prefetch=0,
            grid=grid,
            in_specs=[
                pl.BlockSpec((tm, c_in), lambda i: (i, 0)),                # x tile
                pl.BlockSpec((c_in, chp), lambda i: (0, 0), **resident),   # w1
                pl.BlockSpec((1, chp), lambda i: (0, 0), **resident),      # b1
                pl.BlockSpec((chp, c_out), lambda i: (0, 0), **resident),  # w2
                pl.BlockSpec((1, c_out), lambda i: (0, 0), **resident),    # b2
            ],
            out_specs=pl.BlockSpec((tm, c_out), lambda i: (i, 0)),
            scratch_shapes=scratch,
        ),
        compiler_params=pltpu.CompilerParams(
            dimension_semantics=("parallel",),
            vmem_limit_bytes=vmem_limit,
        ),
        cost_estimate=cost,
    )(x2d, params["w1"], params["b1"], params["w2"], params["b2"])

    return out.reshape(*lead, c_out)


def mlp_reference(x, w1, b1, w2, b2):
    # Exact erf GELU, matching nn.GELU()'s default.
    h = jax.nn.gelu(x @ w1 + b1, approximate=False)
    return h @ w2 + b2


if __name__ == "__main__":
    # Small Swin-like shapes: 2 windows of 8x8 tokens, stage-1 channel dim.
    B, N = 2, 64
    in_features = 96
    out_features = 96

    key = jax.random.PRNGKey(0)
    kx, kw1, kb1, kw2, kb2, kw3, kb3, kw4, kb4 = jax.random.split(key, 9)
    x = jax.random.normal(kx, (B, N, in_features), dtype=jnp.float32)

    # --- Case 1: hidden = 384 (mlp_ratio 4): single-chunk fast path ---------
    hidden1 = 384
    w1 = 0.02 * jax.random.normal(kw1, (in_features, hidden1), dtype=jnp.float32)
    b1 = 0.01 * jax.random.normal(kb1, (hidden1,), dtype=jnp.float32)
    w2 = 0.02 * jax.random.normal(kw2, (hidden1, out_features), dtype=jnp.float32)
    b2 = 0.01 * jax.random.normal(kb2, (hidden1 * 0 + out_features,), dtype=jnp.float32)

    params1 = prepare_mlp_params(w1, b1, w2, b2)     # one-time cast + pad
    mlp1 = jax.jit(lambda a: mlp_pallas(a, params1))
    y1 = jax.block_until_ready(mlp1(x))

    y1_ref = mlp_reference(x, w1, b1, w2, b2)
    assert y1.shape == (B, N, out_features)
    err1 = float(jnp.max(jnp.abs(y1 - y1_ref)))
    assert jnp.allclose(y1, y1_ref, atol=2e-2, rtol=2e-2), err1

    # --- Case 2: hidden = 1536: exercises the chunked-hidden accumulator ----
    hidden2 = 1536
    w3 = 0.02 * jax.random.normal(kw3, (in_features, hidden2), dtype=jnp.float32)
    b3 = 0.01 * jax.random.normal(kb3, (hidden2,), dtype=jnp.float32)
    w4 = 0.02 * jax.random.normal(kw4, (hidden2, out_features), dtype=jnp.float32)
    b4 = 0.01 * jax.random.normal(kb4, (out_features,), dtype=jnp.float32)

    params2 = prepare_mlp_params(w3, b3, w4, b4)
    mlp2 = jax.jit(lambda a: mlp_pallas(a, params2))
    y2 = jax.block_until_ready(mlp2(x))

    y2_ref = mlp_reference(x, w3, b3, w4, b4)
    assert y2.shape == (B, N, out_features)
    err2 = float(jnp.max(jnp.abs(y2 - y2_ref)))
    assert jnp.allclose(y2, y2_ref, atol=2e-2, rtol=2e-2), err2

    print("KERNEL_OK")
</pallas_src>

<mosaic_0001>
module attributes {stable_mosaic.version = 11 : i64} {
  func.func @kernel(%arg0: i32, %arg1: memref<128x96xf32, #tpu.memory_space<vmem>>, %arg2: memref<96x384xbf16, #tpu.memory_space<vmem>>, %arg3: memref<1x384xf32, #tpu.memory_space<vmem>>, %arg4: memref<384x96xbf16, #tpu.memory_space<vmem>>, %arg5: memref<1x96xf32, #tpu.memory_space<vmem>>, %arg6: memref<128x96xf32, #tpu.memory_space<vmem>>) attributes {dimension_semantics = [#tpu.dimension_semantics<parallel>], iteration_bounds = array<i64: 1>, scalar_prefetch = 0 : i64, scratch_operands = 0 : i64, tpu.core_type = #tpu.core_type<tc>, window_params = [{transform_indices = @transform_0, window_bounds = array<i64: 128, 96>}, {pipeline_mode = #tpu.pipeline_mode<synchronous>, transform_indices = @transform_1, window_bounds = array<i64: 96, 384>}, {pipeline_mode = #tpu.pipeline_mode<synchronous>, transform_indices = @transform_2, window_bounds = array<i64: 1, 384>}, {pipeline_mode = #tpu.pipeline_mode<synchronous>, transform_indices = @transform_3, window_bounds = array<i64: 384, 96>}, {pipeline_mode = #tpu.pipeline_mode<synchronous>, transform_indices = @transform_4, window_bounds = array<i64: 1, 96>}, {transform_indices = @transform_5, window_bounds = array<i64: 128, 96>}]} {
    %c0 = arith.constant 0 : index
    %c0_0 = arith.constant 0 : index
    %0 = vector.load %arg1[%c0, %c0_0] : memref<128x96xf32, #tpu.memory_space<vmem>>, vector<128x96xf32>
    %1 = arith.truncf %0 : vector<128x96xf32> to vector<128x96xbf16>
    %c0_1 = arith.constant 0 : index
    %c0_2 = arith.constant 0 : index
    %2 = vector.load %arg2[%c0_1, %c0_2] : memref<96x384xbf16, #tpu.memory_space<vmem>>, vector<96x384xbf16>
    %cst = arith.constant dense<0.000000e+00> : vector<128x384xf32>
    %3 = tpu.matmul %1, %2, %cst {dimension_numbers = #tpu.dot_dimension_numbers<[1], [0], [0], [1], [0, 0, 1, 1], [], []>} : vector<128x96xbf16>, vector<96x384xbf16>, vector<128x384xf32> -> vector<128x384xf32>
    %c0_3 = arith.constant 0 : index
    %c0_4 = arith.constant 0 : index
    %4 = vector.load %arg3[%c0_3, %c0_4] : memref<1x384xf32, #tpu.memory_space<vmem>>, vector<1x384xf32>
    %5 = vector.broadcast %4 : vector<1x384xf32> to vector<128x384xf32>
    %6 = arith.addf %3, %5 : vector<128x384xf32>
    %7 = arith.mulf %6, %6 : vector<128x384xf32>
    %8 = arith.mulf %6, %7 : vector<128x384xf32>
    %cst_5 = arith.constant 4.471500e-02 : f32
    %9 = vector.broadcast %cst_5 : f32 to vector<128x384xf32>
    %10 = arith.mulf %9, %8 : vector<128x384xf32>
    %11 = arith.addf %6, %10 : vector<128x384xf32>
    %cst_6 = arith.constant 0.797884583 : f32
    %12 = vector.broadcast %cst_6 : f32 to vector<128x384xf32>
    %13 = arith.mulf %12, %11 : vector<128x384xf32>
    %14 = math.tanh %13 : vector<128x384xf32>
    %cst_7 = arith.constant 1.000000e+00 : f32
    %15 = vector.broadcast %cst_7 : f32 to vector<128x384xf32>
    %16 = arith.addf %15, %14 : vector<128x384xf32>
    %cst_8 = arith.constant 5.000000e-01 : f32
    %17 = vector.broadcast %cst_8 : f32 to vector<128x384xf32>
    %18 = arith.mulf %17, %16 : vector<128x384xf32>
    %19 = arith.mulf %6, %18 : vector<128x384xf32>
    %20 = arith.truncf %19 : vector<128x384xf32> to vector<128x384xbf16>
    %c0_9 = arith.constant 0 : index
    %c0_10 = arith.constant 0 : index
    %21 = vector.load %arg4[%c0_9, %c0_10] : memref<384x96xbf16, #tpu.memory_space<vmem>>, vector<384x96xbf16>
    %cst_11 = arith.constant dense<0.000000e+00> : vector<128x96xf32>
    %22 = tpu.matmul %20, %21, %cst_11 {dimension_numbers = #tpu.dot_dimension_numbers<[1], [0], [0], [1], [0, 0, 1, 1], [], []>} : vector<128x384xbf16>, vector<384x96xbf16>, vector<128x96xf32> -> vector<128x96xf32>
    %c0_12 = arith.constant 0 : index
    %c0_13 = arith.constant 0 : index
    %23 = vector.load %arg5[%c0_12, %c0_13] : memref<1x96xf32, #tpu.memory_space<vmem>>, vector<1x96xf32>
    %24 = vector.broadcast %23 : vector<1x96xf32> to vector<128x96xf32>
    %25 = arith.addf %22, %24 : vector<128x96xf32>
    %c0_14 = arith.constant 0 : index
    %c0_15 = arith.constant 0 : index
    %26 = vector.load %arg6[%c0_14, %c0_15] : memref<128x96xf32, #tpu.memory_space<vmem>>, vector<128x96xf32>
    tpu.vector_store %arg6[%c0_14, %c0_15], %25 {strides = array<i32>} : memref<128x96xf32, #tpu.memory_space<vmem>>, vector<128x96xf32>,
    return
  }
  func.func @transform_0(%arg0: i32) -> (i32, i32) {
    %c0_i32 = arith.constant 0 : i32
    %c0_i32_0 = arith.constant 0 : i32
    return %arg0, %c0_i32 : i32, i32
  }
  func.func @transform_1(%arg0: i32) -> (i32, i32) {
    %c0_i32 = arith.constant 0 : i32
    %c0_i32_0 = arith.constant 0 : i32
    %c0_i32_1 = arith.constant 0 : i32
    return %c0_i32, %c0_i32_0 : i32, i32
  }
  func.func @transform_2(%arg0: i32) -> (i32, i32) {
    %c0_i32 = arith.constant 0 : i32
    %c0_i32_0 = arith.constant 0 : i32
    %c0_i32_1 = arith.constant 0 : i32
    return %c0_i32, %c0_i32_0 : i32, i32
  }
  func.func @transform_3(%arg0: i32) -> (i32, i32) {
    %c0_i32 = arith.constant 0 : i32
    %c0_i32_0 = arith.constant 0 : i32
    %c0_i32_1 = arith.constant 0 : i32
    return %c0_i32, %c0_i32_0 : i32, i32
  }
  func.func @transform_4(%arg0: i32) -> (i32, i32) {
    %c0_i32 = arith.constant 0 : i32
    %c0_i32_0 = arith.constant 0 : i32
    %c0_i32_1 = arith.constant 0 : i32
    return %c0_i32, %c0_i32_0 : i32, i32
  }
  func.func @transform_5(%arg0: i32) -> (i32, i32) {
    %c0_i32 = arith.constant 0 : i32
    %c0_i32_0 = arith.constant 0 : i32
    return %arg0, %c0_i32 : i32, i32
  }
}

</mosaic_0001>

<bundles_post_ra>
// kernel: _lambda_.1
= control target key start
LH: loop header
LB: loop body
LE: loop exit
PB: predicated region body
PF: predicated region fallthrough
CT: control target
= control target key end

     0   :  { %10 = vsyncpa [#allocation3], 0  ;;  %s2471_s0 = inlined_call_operand.hbm [shape: f32[128,96], index: 0, kind: input, shape index: {}]   ;;  %s2472_s1 = inlined_call_operand.hbm [shape: bf16[96,384], index: 1, kind: input, shape index: {}]   ;;  %s2473_s2 = inlined_call_operand.vmem [shape: f32[1,384], index: 2, kind: input, shape index: {}]   ;;  %s2474_s3 = inlined_call_operand.hbm [shape: bf16[384,96], index: 3, kind: input, shape index: {}]   ;;  %s2475_s4 = inlined_call_operand.vmem [shape: f32[1,96], index: 4, kind: input, shape index: {}]   ;;  %s2476_s5 = inlined_call_operand.hbm [shape: f32[128,96], index: 5, kind: output, shape index: {}]  }
   0x1   :  { %11 = vsyncpa [#allocation6], 0 }
   0x2   :  { %12 = vsyncpa [#allocation4], 0  ;;  %s1796_s18 = smov [#allocation5]  }
   0x3   :  { %s30_s19 = sshll.u32 %s1796_s18, 4  ;;  %s31_s19 = int_to_ptr.vmem [resolvable:$true] %s30_s19 }
   0x4   :  { %s1718_s20 = scalar_lea.vmem %s31_s19, 2304  ;;  %p1723_p1 = scmp.lt.s32.totalorder %s31_s19, %s31_s19 }
   0x5   :  { %p1719_p0 = scmp.ne.s32.totalorder %s31_s19, %s1718_s20  ;;  %p1724_p2 = scmp.lt.s32.totalorder %s1718_s20, %s1718_s20 }
   0x7   :  { %p1725_p3 = por %p1724_p2, %p1723_p1 }
   0x9   :  { %p1726_p4 = pnand %p1725_p3, %p1719_p0 }
   0xb   :  { %1729 = shalt.err (!%p1726_p4)
}
   0xc   :  { %s1797_s21 = smov 192   ;;  %s1798_s22 = smov 12  }
   0xd   :  { %36 = dma.hbm_to_vmem [thread:$0]  %s2472_s1, 2304, %s31_s19, [#allocation6], %s1797_s21, %s1797_s21, %s1798_s22  }
   0xe   :  { %s1799_s25 = smov [#allocation2]  }
   0xf   :  { %s18_s26 = sshll.u32 %s1799_s25, 4  ;;  %s19_s26 = int_to_ptr.vmem [resolvable:$true] %s18_s26 }
  0x10   :  { %s1738_s27 = scalar_lea.vmem %s19_s26, 2048  ;;  %p1743_p6 = scmp.lt.s32.totalorder %s19_s26, %s19_s26 }
  0x11   :  { %p1739_p5 = scmp.ne.s32.totalorder %s19_s26, %s1738_s27  ;;  %p1744_p7 = scmp.lt.s32.totalorder %s1738_s27, %s1738_s27 }
  0x13   :  { %p1745_p8 = por %p1744_p7, %p1743_p6 }
  0x15   :  { %p1746_p9 = pnand %p1745_p8, %p1739_p5 }
  0x17   :  { %1749 = shalt.err (!%p1746_p9)
}
  0x18   :  { %s1800_s28 = smov 128   ;;  %s1801_s29 = smov 8  }
  0x19   :  { %24 = dma.hbm_to_vmem [thread:$0]  %s2471_s0, 2048, %s19_s26, [#allocation3], %s1800_s28, %s1800_s28, %s1801_s29  }
  0x1a   :  { %s1802_s1 = smov [#allocation7]  }
  0x1b   :  { %s44_s7 = sshll.u32 %s1802_s1, 4  ;;  %s45_s7 = int_to_ptr.vmem [resolvable:$true] %s44_s7 }
  0x1c   :  { %s1758_s8 = scalar_lea.vmem %s45_s7, 3072  ;;  %p1763_p11 = scmp.lt.s32.totalorder %s45_s7, %s45_s7 }
  0x1d   :  { %p1759_p10 = scmp.ne.s32.totalorder %s45_s7, %s1758_s8  ;;  %p1764_p12 = scmp.lt.s32.totalorder %s1758_s8, %s1758_s8 }
  0x1f   :  { %p1765_p13 = por %p1764_p12, %p1763_p11 }
  0x21   :  { %p1766_p0 = pnand %p1765_p13, %p1759_p10 }
  0x23   :  { %1769 = shalt.err (!%p1766_p0)
}
  0x24   :  { %s1803_s9 = smov 64   ;;  %s1804_s10 = smov 4  }
  0x25   :  { %50 = dma.hbm_to_vmem [thread:$0]  %s2474_s3, 3072, %s45_s7, [#allocation6], %s1803_s9, %s1803_s9, %s1804_s10  }
  0x26   :  { %1790 = dma.done.wait [#allocation3], 2048  }
  0x27   :  { %1791 = vsyncadd [#allocation3], 4294965248 }
  0x28   :  { %1792 = dma.done.wait [#allocation6], 5376  }
  0x29   :  { %1793 = vsyncadd [#allocation6], 4294961920  ;;  %v1805_v0 = vmov 0   ;;  %v1566_v1 = vld [vmem:[#allocation5 + $0x7c] ss:$12 sps:$4 sm:$0xff]   ;;  %v63_v15 = vld [vmem:[#allocation2] sm:$0xff] }
  0x2a   :  { %281 = vmatprep.mubr.bf16.mxu0 %v1805_v0  ;;  %v1568_v2 = vld [vmem:[#allocation5 + $0x80] ss:$12 sps:$4 sm:$0xff]   ;;  %253 = vmatprep.subr.bf16.mxu0 %v1566_v1  ;;  %v1569_v3 = vld [vmem:[#allocation5 + $0x78] ss:$12 sps:$4 sm:$0xff]   ;;  %v1572_v5 = vld [vmem:[#allocation5 + $0x68] ss:$12 sps:$4 sm:$0xff]  }
  0x2b   :  { %1495 = vmatprep.subr.bf16.mxu1 %v1568_v2  ;;  %v1570_v4 = vld [vmem:[#allocation5 + $0x64] ss:$12 sps:$4 sm:$0xff]   ;;  %254 = vmatpush1.bf16.msra.mxu0 %v1569_v3  ;;  %v1573_v6 = vld [vmem:[#allocation5 + $0x60] ss:$12 sps:$4 sm:$0xff]   ;;  %v1577_v9 = vld [vmem:[#allocation5 + $0x48] ss:$12 sps:$4 sm:$0xff]   ;;  %v113_v3 = vlaneseq }
  0x2c   :  { %1496 = vmatpush3.bf16.msra.mxu1 %v1568_v2  ;;  %255 = vmatprep.subr.bf16.mxu0 %v1570_v4  ;;  %v1574_v7 = vld [vmem:[#allocation5 + $0x4c] ss:$12 sps:$4 sm:$0xff]   ;;  %v1576_v8 = vld [vmem:[#allocation5 + $0x50] ss:$12 sps:$4 sm:$0xff]   ;;  %v1578_v10 = vld [vmem:[#allocation5 + $0x34] ss:$12 sps:$4 sm:$0xff]  }
  0x2d   :  { %1497 = vmatprep.subr.bf16.mxu1 %v1572_v5  ;;  %v1580_v11 = vld [vmem:[#allocation5 + $0x38] ss:$12 sps:$4 sm:$0xff]   ;;  %v1581_v12 = vld [vmem:[#allocation5 + $0x30] ss:$12 sps:$4 sm:$0xff]   ;;  %v1584_v14 = vld [vmem:[#allocation5 + $0x20] ss:$12 sps:$4 sm:$0xff]  }
  0x2e   :  { %v1582_v13 = vld [vmem:[#allocation5 + $0x1c] ss:$12 sps:$4 sm:$0xff]   ;;  %vm224_vm0 = vcmask 785408   ;;  %v1585_v18 = vld [vmem:[#allocation5 + $0x18] ss:$12 sps:$4 sm:$0xff]   ;;  %v65_v22 = vld [vmem:[#allocation2 + $0x10] sm:$0xff] }
  0x2f   :  { %256 = vmatpush1.bf16.msra.mxu0 %v1573_v6  ;;  %v64_v16 = vld [vmem:[#allocation2 + $0x8] sm:$0xff]  ;;  %v1586_v19 = vld [vmem:[#allocation5 + $0x4] ss:$12 sps:$4 sm:$0xff]   ;;  %v66_v23 = vld [vmem:[#allocation2 + $0x18] sm:$0xff]  ;;  %v114_v4 = vshrl.u32 %v113_v3, 7 }
  0x30   :  { %1498 = vmatpush3.bf16.msra.mxu1 %v1572_v5  ;;  %257 = vmatprep.subr.bf16.mxu0 %v1574_v7  ;;  %v79_v17 = vpack.c.bf16 %v64_v16, %v63_v15  ;;  %v1588_v20 = vld [vmem:[#allocation5 + $0x8] ss:$12 sps:$4 sm:$0xff]   ;;  %v1589_v21 = vld [vmem:[#allocation5] ss:$12 sps:$4 sm:$0xff]   ;;  %v80_v26 = vpack.c.bf16 %v66_v23, %v65_v22  ;;  %v70_v29 = vld [vmem:[#allocation2 + $0x38] sm:$0xff] }
  0x31   :  { %1499 = vmatprep.subr.bf16.mxu1 %v1576_v8  ;;  %v67_v24 = vld [vmem:[#allocation2 + $0x20] sm:$0xff]  ;;  %v68_v25 = vld [vmem:[#allocation2 + $0x28] sm:$0xff]  ;;  %v69_v28 = vld [vmem:[#allocation2 + $0x30] sm:$0xff]  ;;  %v115_v5 = vsub.s32 0, %v114_v4  ;;  %v123_v6 = vsub.s32 2, %v114_v4 }
  0x32   :  { %1507 = vmatprep.mubr.msk.bf16.mxu1 %vm224_vm0, %v79_v17  ;;  %v81_v27 = vpack.c.bf16 %v68_v25, %v67_v24  ;;  %v71_v30 = vld [vmem:[#allocation2 + $0x40] sm:$0xff]  ;;  %v72_v31 = vld [vmem:[#allocation2 + $0x48] sm:$0xff]  ;;  %v82_v32 = vpack.c.bf16 %v70_v29, %v69_v28  ;;  %v73_v34 = vld [vmem:[#allocation2 + $0x50] sm:$0xff] }
  0x33   :  { %258 = vmatpush1.bf16.msra.mxu0 %v1577_v9  ;;  %v83_v33 = vpack.c.bf16 %v72_v31, %v71_v30  ;;  %v74_v35 = vld [vmem:[#allocation2 + $0x58] sm:$0xff]  ;;  %v75_v36 = vld [vmem:[#allocation2 + $0x60] sm:$0xff]  ;;  %v76_v37 = vld [vmem:[#allocation2 + $0x68] sm:$0xff] }
  0x34   :  { %1500 = vmatpush3.bf16.msra.mxu1 %v1576_v8  ;;  %259 = vmatprep.subr.bf16.mxu0 %v1578_v10  ;;  %v84_v38 = vpack.c.bf16 %v74_v35, %v73_v34  ;;  %v85_v39 = vpack.c.bf16 %v76_v37, %v75_v36  ;;  %v77_v40 = vld [vmem:[#allocation2 + $0x70] sm:$0xff]  ;;  %v78_v41 = vld [vmem:[#allocation2 + $0x78] sm:$0xff]  ;;  %v1590_v43 = vld [vmem:[#allocation7 + $0x78] sm:$0xff]   ;;  %v119_v8 = vsub.s32 1, %v114_v4 }
  0x35   :  { %1501 = vmatprep.subr.bf16.mxu1 %v1580_v11  ;;  %v86_v42 = vpack.c.bf16 %v78_v41, %v77_v40  ;;  %v1592_v44 = vld [vmem:[#allocation7 + $0xb8] sm:$0xff]   ;;  %v1593_v46 = vld [vmem:[#allocation7 + $0x70] sm:$0xff]   ;;  %v1596_v49 = vld [vmem:[#allocation7 + $0x68] sm:$0xff]  }
  0x36   :  { %v1591_v45 = vld [vmem:[#allocation7 + $0x38] sm:$0xff]   ;;  %v1595_v47 = vld [vmem:[#allocation7 + $0xb0] sm:$0xff]   ;;  %v1598_v50 = vld [vmem:[#allocation7 + $0xa8] sm:$0xff]  }
  0x37   :  { %260 = vmatpush1.bf16.msra.mxu0 %v1581_v12  ;;  %v1594_v48 = vld [vmem:[#allocation7 + $0x30] sm:$0xff]   ;;  %v1597_v51 = vld [vmem:[#allocation7 + $0x28] sm:$0xff]   ;;  %v1599_v52 = vld [vmem:[#allocation7 + $0x60] sm:$0xff]  }
  0x38   :  { %1502 = vmatpush3.bf16.msra.mxu1 %v1580_v11  ;;  %261 = vmatprep.subr.bf16.mxu0 %v1582_v13  ;;  %v1601_v53 = vld [vmem:[#allocation7 + $0xa0] sm:$0xff]   ;;  %v1602_v55 = vld [vmem:[#allocation7 + $0x58] sm:$0xff]   ;;  %v1605_v58 = vld [vmem:[#allocation7 + $0x50] sm:$0xff]  }
  0x39   :  { %1503 = vmatprep.subr.bf16.mxu1 %v1584_v14  ;;  %v1600_v54 = vld [vmem:[#allocation7 + $0x20] sm:$0xff]   ;;  %v1604_v56 = vld [vmem:[#allocation7 + $0x98] sm:$0xff]   ;;  %v1607_v59 = vld [vmem:[#allocation7 + $0x90] sm:$0xff]  }
  0x3a   :  { %v1603_v57 = vld [vmem:[#allocation7 + $0x18] sm:$0xff]   ;;  %v1606_v60 = vld [vmem:[#allocation7 + $0x10] sm:$0xff]   ;;  %v1608_v61 = vld [vmem:[#allocation7 + $0x48] sm:$0xff]  }
  0x3b   :  { %262 = vmatpush1.bf16.msra.mxu0 %v1585_v18  ;;  %v1610_v62 = vld [vmem:[#allocation7 + $0x88] sm:$0xff]   ;;  %v1613_v1 = vld [vmem:[#allocation7 + $0x80] sm:$0xff]   ;;  %v111_v7 = vld [vmem:[%s2473_s2] sm:$0x7] }
  0x3c   :  { %1504 = vmatpush3.bf16.msra.mxu1 %v1584_v14  ;;  %263 = vmatprep.subr.bf16.mxu0 %v1586_v19  ;;  %v1609_v63 = vld [vmem:[#allocation7 + $0x8] sm:$0xff]   ;;  %v1612_v2 = vld [vmem:[#allocation7] sm:$0xff]   ;;  %v1876_v9 = vrot.slane %v111_v7, %v115_v5  ;;  %v1878_v10 = vrot.slane %v111_v7, %v123_v6  ;;  %v1880_v11 = vrot.slane %v111_v7, %v119_v8 }
  0x3d   :  { %1505 = vmatprep.subr.bf16.mxu1 %v1588_v20 }
  0x3f   :  { %264 = vmatpush1.bf16.msra.mxu0 %v1589_v21 }
  0x40   :  { %1506 = vmatpush3.bf16.msra.mxu1 %v1588_v20  ;;  %1523 = vmatprep.subr.bf16.mxu0 %v1592_v44 }
  0x41   :  { %1415 = vmatprep.subr.bf16.mxu1 %v1590_v43 }
  0x42   :  { %1360 = vmatmul.mubr.msk.bf16.vlgmr.msra.gmra.mxu0 %vm224_vm0, %v79_v17 }
  0x43   :  { %1508 = vmatmul.mubr.msk.bf16.vlgmr.msra.gmra.mxu1 %vm224_vm0, %v80_v26  ;;  %291 = vmatprep.mubr.bf16.mxu0 %v1805_v0 }
  0x44   :  { %1511 = vmatprep.mubr.msk.bf16.mxu1 %vm224_vm0, %v81_v27  ;;  %1416 = vmatpush3.bf16.msra.mxu1 %v1591_v45 }
  0x45   :  { %1524 = vmatpush3.bf16.msra.mxu0 %v1592_v44  ;;  %1417 = vmatprep.subr.bf16.mxu1 %v1593_v46 }
  0x46   :  { %1525 = vmatprep.subr.bf16.mxu0 %v1595_v47 }
  0x48   :  { %1418 = vmatpush3.bf16.msra.mxu1 %v1594_v48 }
  0x49   :  { %1526 = vmatpush3.bf16.msra.mxu0 %v1595_v47  ;;  %1419 = vmatprep.subr.bf16.mxu1 %v1596_v49 }
  0x4a   :  { %1361 = vmatmul.mubr.msk.bf16.gmra.mxu0 %vm224_vm0, %v80_v26  ;;  %1527 = vmatprep.subr.bf16.mxu0 %v1598_v50 }
  0x4b   :  { %1512 = vmatmul.mubr.msk.bf16.gmra.mxu1 %vm224_vm0, %v82_v32  ;;  %301 = vmatprep.mubr.bf16.mxu0 %v1805_v0 }
  0x4c   :  { %1515 = vmatprep.mubr.msk.bf16.mxu1 %vm224_vm0, %v83_v33  ;;  %1420 = vmatpush3.bf16.msra.mxu1 %v1597_v51 }
  0x4d   :  { %1528 = vmatpush3.bf16.msra.mxu0 %v1598_v50  ;;  %1421 = vmatprep.subr.bf16.mxu1 %v1599_v52 }
  0x4e   :  { %1529 = vmatprep.subr.bf16.mxu0 %v1601_v53 }
  0x50   :  { %1422 = vmatpush3.bf16.msra.mxu1 %v1600_v54 }
  0x51   :  { %1530 = vmatpush3.bf16.msra.mxu0 %v1601_v53  ;;  %1423 = vmatprep.subr.bf16.mxu1 %v1602_v55 }
  0x52   :  { %1362 = vmatmul.mubr.msk.bf16.gmra.mxu0 %vm224_vm0, %v81_v27  ;;  %1531 = vmatprep.subr.bf16.mxu0 %v1604_v56 }
  0x53   :  { %1516 = vmatmul.mubr.msk.bf16.gmra.mxu1 %vm224_vm0, %v84_v38  ;;  %311 = vmatprep.mubr.bf16.mxu0 %v1805_v0 }
  0x54   :  { %1519 = vmatprep.mubr.msk.bf16.mxu1 %vm224_vm0, %v85_v39  ;;  %1424 = vmatpush3.bf16.msra.mxu1 %v1603_v57 }
  0x55   :  { %1532 = vmatpush3.bf16.msra.mxu0 %v1604_v56  ;;  %1425 = vmatprep.subr.bf16.mxu1 %v1605_v58 }
  0x56   :  { %1533 = vmatprep.subr.bf16.mxu0 %v1607_v59 }
  0x58   :  { %1426 = vmatpush3.bf16.msra.mxu1 %v1606_v60 }
  0x59   :  { %1534 = vmatpush3.bf16.msra.mxu0 %v1607_v59  ;;  %1427 = vmatprep.subr.bf16.mxu1 %v1608_v61 }
  0x5a   :  { %1363 = vmatmul.mubr.msk.bf16.gmra.mxu0 %vm224_vm0, %v82_v32  ;;  %1535 = vmatprep.subr.bf16.mxu0 %v1610_v62 }
  0x5b   :  { %1520 = vmatmul.mubr.msk.bf16.gmra.mxu1 %vm224_vm0, %v86_v42  ;;  %321 = vmatprep.mubr.bf16.mxu0 %v1805_v0 }
  0x5c   :  { %1428 = vmatpush3.bf16.msra.mxu1 %v1609_v63 }
  0x5d   :  { %1536 = vmatpush3.bf16.msra.mxu0 %v1610_v62 }
  0x5e   :  { %1537 = vmatprep.subr.bf16.mxu0 %v1613_v1 }
  0x61   :  { %1538 = vmatpush3.bf16.msra.mxu0 %v1613_v1 }
  0x62   :  { %1364 = vmatmul.mubr.msk.bf16.gmra.mxu0 %vm224_vm0, %v83_v33 }
  0x63   :  { %331 = vmatprep.mubr.bf16.mxu0 %v1805_v0 }
  0x6a   :  { %1365 = vmatmul.mubr.msk.bf16.gmra.mxu0 %vm224_vm0, %v84_v38 }
  0x6b   :  { %341 = vmatprep.mubr.bf16.mxu0 %v1805_v0 }
  0x72   :  { %1366 = vmatmul.mubr.msk.bf16.gmra.mxu0 %vm224_vm0, %v85_v39 }
  0x73   :  { %351 = vmatprep.mubr.bf16.mxu0 %v1805_v0  ;;  %v1611_v0 = vld [vmem:[#allocation7 + $0x40] sm:$0xff]  }
  0x74   :  { %1429 = vmatprep.subr.bf16.mxu1 %v1611_v0 }
  0x75   :  { %1430 = vmatpush3.bf16.msra.mxu1 %v1612_v2 }
  0x7a   :  { %1367 = vmatmul.mubr.msk.bf16.gmra.mxu0 %vm224_vm0, %v86_v42 }
 0x102   :  { %v283_v12 = vpop.f32.mrf.mxu0 }
 0x103   :  { %v1509_v13 = vpop.f32.mrf.mxu1  ;;  %v1883_v14 = vadd.f32 %v283_v12, %v1876_v9 }
 0x104   :  { %v1886_v15 = vadd.f32 %v1509_v13, %v1878_v10  ;;  %v285_v16 = vpop.f32.mrf.mxu0 }
 0x105   :  { %v396_v17 = vpop.f32.mrf.mxu1  ;;  %v459_v18 = vmul.f32 %v1883_v14, %v1883_v14  ;;  %v1893_v20 = vadd.f32 %v285_v16, %v1880_v11 }
 0x106   :  { %v467_v19 = vmul.f32 %v1886_v15, %v1886_v15  ;;  %v1896_v21 = vadd.f32 %v396_v17, %v1878_v10  ;;  %v287_v22 = vpop.f32.mrf.mxu0 }
 0x107   :  { %v1510_v23 = vpop.f32.mrf.mxu1  ;;  %v507_v24 = vmul.f32 %v459_v18, %v1883_v14  ;;  %v460_v26 = vmul.f32 %v1893_v20, %v1893_v20  ;;  %v1905_v28 = vadd.f32 %v287_v22, %v1876_v9 }
 0x108   :  { %v515_v25 = vmul.f32 %v467_v19, %v1886_v15  ;;  %v461_v27 = vmul.f32 %v1896_v21, %v1896_v21  ;;  %v1908_v29 = vadd.f32 %v1510_v23, %v1878_v10  ;;  %v289_v30 = vpop.f32.mrf.mxu0 }
 0x109   :  { %v399_v31 = vpop.f32.mrf.mxu1  ;;  %v555_v32 = vmul.f32 0.044715, %v507_v24  ;;  %v508_v34 = vmul.f32 %v460_v26, %v1893_v20  ;;  %v462_v36 = vmul.f32 %v1905_v28, %v1905_v28  ;;  %v1917_v38 = vadd.f32 %v289_v30, %v1880_v11 }
 0x10a   :  { %v563_v33 = vmul.f32 0.044715, %v515_v25  ;;  %v509_v35 = vmul.f32 %v461_v27, %v1896_v21  ;;  %v470_v37 = vmul.f32 %v1908_v29, %v1908_v29  ;;  %v1920_v39 = vadd.f32 %v399_v31, %v1878_v10  ;;  %v293_v40 = vpop.f32.mrf.mxu0 }
 0x10b   :  { %v1513_v41 = vpop.f32.mrf.mxu1  ;;  %v603_v42 = vadd.f32 %v555_v32, %v1883_v14  ;;  %v556_v44 = vmul.f32 0.044715, %v508_v34  ;;  %v510_v46 = vmul.f32 %v462_v36, %v1905_v28  ;;  %v463_v48 = vmul.f32 %v1917_v38, %v1917_v38 }
 0x10c   :  { %v611_v43 = vadd.f32 %v563_v33, %v1886_v15  ;;  %v557_v45 = vmul.f32 0.044715, %v509_v35  ;;  %v518_v47 = vmul.f32 %v470_v37, %v1908_v29  ;;  %v464_v49 = vmul.f32 %v1920_v39, %v1920_v39  ;;  %v295_v50 = vpop.f32.mrf.mxu0 }
 0x10d   :  { %v651_v51 = vmul.f32 0.7978846, %v603_v42  ;;  %v604_v53 = vadd.f32 %v556_v44, %v1893_v20  ;;  %v558_v55 = vmul.f32 0.044715, %v510_v46  ;;  %v511_v57 = vmul.f32 %v463_v48, %v1917_v38  ;;  %v412_v59 = vpop.f32.mrf.mxu1 }
 0x10e   :  { %v659_v52 = vmul.f32 0.7978846, %v611_v43  ;;  %v605_v54 = vadd.f32 %v557_v45, %v1896_v21  ;;  %v566_v56 = vmul.f32 0.044715, %v518_v47  ;;  %v512_v58 = vmul.f32 %v464_v49, %v1920_v39  ;;  %v297_v60 = vpop.f32.mrf.mxu0 }
 0x10f   :  { %1614 = vtanh.f32 %v651_v51  ;;  %v652_v61 = vmul.f32 0.7978846, %v604_v53  ;;  %v1935_v62 = vadd.f32 %v293_v40, %v1876_v9  ;;  %v606_v63 = vadd.f32 %v558_v55, %v1905_v28  ;;  %v1514_v13 = vpop.f32.mrf.mxu1 }
 0x110   :  { %1616 = vtanh.f32 %v659_v52  ;;  %v614_v0 = vadd.f32 %v566_v56, %v1908_v29  ;;  %v559_v1 = vmul.f32 0.044715, %v511_v57  ;;  %v299_v2 = vpop.f32.mrf.mxu0  ;;  %v653_v3 = vmul.f32 0.7978846, %v605_v54 }
 0x111   :  { %v560_v4 = vmul.f32 0.044715, %v512_v58  ;;  %v465_v5 = vmul.f32 %v1935_v62, %v1935_v62  ;;  %v1942_v6 = vadd.f32 %v1513_v41, %v1878_v10  ;;  %1618 = vtanh.f32 %v652_v61  ;;  %v415_v34 = vpop.f32.mrf.mxu1 }
 0x112   :  { %v654_v7 = vmul.f32 0.7978846, %v606_v63  ;;  %v662_v8 = vmul.f32 0.7978846, %v614_v0  ;;  %v607_v12 = vadd.f32 %v559_v1, %v1917_v38  ;;  %v303_v16 = vpop.f32.mrf.mxu0  ;;  %v1950_v22 = vadd.f32 %v295_v50, %v1880_v11 }
 0x113   :  { %v608_v17 = vadd.f32 %v560_v4, %v1920_v39  ;;  %v513_v18 = vmul.f32 %v465_v5, %v1935_v62  ;;  %v479_v19 = vmul.f32 %v1942_v6, %v1942_v6  ;;  %v1953_v23 = vadd.f32 %v412_v59, %v1878_v10  ;;  %v1517_v54 = vpop.f32.mrf.mxu1 }
 0x114   :  { %1620 = vtanh.f32 %v654_v7  ;;  %v1956_v24 = vadd.f32 %v297_v60, %v1876_v9  ;;  %v1958_v25 = vpop.f32.mrf.mxu0  ;;  %v655_v26 = vmul.f32 0.7978846, %v607_v12  ;;  %v466_v31 = vmul.f32 %v1950_v22, %v1950_v22 }
 0x115   :  { %1622 = vtanh.f32 %v662_v8  ;;  %v561_v27 = vmul.f32 0.044715, %v513_v18  ;;  %v527_v30 = vmul.f32 %v479_v19, %v1942_v6  ;;  %v473_v32 = vmul.f32 %v1953_v23, %v1953_v23  ;;  %v428_v18 = vpop.f32.mrf.mxu1 }
 0x116   :  { %1624 = vtanh.f32 %v653_v3  ;;  %v468_v33 = vmul.f32 %v1956_v24, %v1956_v24  ;;  %v1967_v35 = vpop.f32.mrf.mxu0  ;;  %v656_v36 = vmul.f32 0.7978846, %v608_v17  ;;  %v1971_v41 = vadd.f32 %v1514_v13, %v1878_v10 }
 0x117   :  { %v609_v37 = vadd.f32 %v561_v27, %v1935_v62  ;;  %v575_v40 = vmul.f32 0.044715, %v527_v30  ;;  %v514_v42 = vmul.f32 %v466_v31, %v1950_v22  ;;  %v521_v43 = vmul.f32 %v473_v32, %v1953_v23 }
 0x118   :  { %v516_v44 = vmul.f32 %v468_v33, %v1956_v24  ;;  %v1977_v45 = vadd.f32 %v299_v2, %v1880_v11  ;;  %v1979_v46 = vpop.f32.mrf.mxu0  ;;  %1626 = vtanh.f32 %v655_v26  ;;  %v482_v48 = vmul.f32 %v1971_v41, %v1971_v41 }
 0x119   :  { %v623_v47 = vadd.f32 %v575_v40, %v1942_v6  ;;  %v1985_v49 = vadd.f32 %v415_v34, %v1878_v10  ;;  %v562_v50 = vmul.f32 0.044715, %v514_v42  ;;  %v569_v51 = vmul.f32 0.044715, %v521_v43 }
 0x11a   :  { %v564_v52 = vmul.f32 0.044715, %v516_v44  ;;  %v469_v53 = vmul.f32 %v1977_v45, %v1977_v45  ;;  %v1989_v55 = vpop.f32.mrf.mxu0  ;;  %1628 = vtanh.f32 %v656_v36  ;;  %v657_v56 = vmul.f32 0.7978846, %v609_v37 }
 0x11b   :  { %v530_v57 = vmul.f32 %v482_v48, %v1971_v41  ;;  %v476_v58 = vmul.f32 %v1985_v49, %v1985_v49  ;;  %v671_v60 = vmul.f32 0.7978846, %v623_v47  ;;  %v610_v61 = vadd.f32 %v562_v50, %v1950_v22  ;;  %v1518_v48 = vpop.f32.mrf.mxu1 }
 0x11c   :  { %v1615_v59 = vpop.eup %1614  ;;  %v617_v63 = vadd.f32 %v569_v51, %v1953_v23  ;;  %v517_v0 = vmul.f32 %v469_v53, %v1977_v45  ;;  %v612_v3 = vadd.f32 %v564_v52, %v1956_v24  ;;  %v1999_v7 = vpop.f32.mrf.mxu0  ;;  %v2002_v17 = vadd.f32 %v303_v16, %v1876_v9 }
 0x11d   :  { %v1617_v1 = vpop.eup %1616  ;;  %v747_v2 = vadd.f32 1.0, %v1615_v59  ;;  %v578_v4 = vmul.f32 0.044715, %v530_v57  ;;  %v524_v5 = vmul.f32 %v476_v58, %v1985_v49  ;;  %v658_v12 = vmul.f32 0.7978846, %v610_v61 }
 0x11e   :  { %v755_v8 = vadd.f32 1.0, %v1617_v1  ;;  %v665_v13 = vmul.f32 0.7978846, %v617_v63  ;;  %2492 = vst [vmem:[#allocation12_spill] sm:$0xff] %v2002_v17  ;;  %v2004_v19 = vpop.eup %1618  ;;  %1630 = vtanh.f32 %v657_v56  ;;  %v565_v30 = vmul.f32 0.044715, %v517_v0  ;;  %v2013_v40 = vpop.f32.mrf.mxu0 }
 0x11f   :  { %v795_v26 = vmul.f32 0.5, %v747_v2  ;;  %v626_v27 = vadd.f32 %v578_v4, %v1971_v41  ;;  %1632 = vtanh.f32 %v671_v60  ;;  %v572_v32 = vmul.f32 0.044715, %v524_v5  ;;  %v431_v2 = vpop.f32.mrf.mxu1 }
 0x120   :  { %v803_v31 = vmul.f32 0.5, %v755_v8  ;;  %v471_v33 = vmul.f32 %v2002_v17, %v2002_v17  ;;  %1634 = vtanh.f32 %v658_v12  ;;  %v660_v16 = vmul.f32 0.7978846, %v612_v3 }
 0x121   :  { %v1621_v34 = vpop.eup %1620  ;;  %v2010_v36 = vmul.f32 %v795_v26, %v1883_v14  ;;  %v613_v37 = vadd.f32 %v565_v30, %v1977_v45  ;;  %1636 = vtanh.f32 %v665_v13  ;;  %v674_v44 = vmul.f32 0.7978846, %v626_v27 }
 0x122   :  { %v1623_v42 = vpop.eup %1622  ;;  %v750_v43 = vadd.f32 1.0, %v1621_v34  ;;  %v620_v47 = vadd.f32 %v572_v32, %v1985_v49  ;;  %v2019_v51 = vmul.f32 %v803_v31, %v1886_v15  ;;  %v519_v53 = vmul.f32 %v471_v33, %v2002_v17  ;;  %v2032_v15 = vpop.f32.mrf.mxu0 }
 0x123   :  { %v2016_v50 = vpop.eup %1624  ;;  %v758_v14 = vadd.f32 1.0, %v1623_v42  ;;  %v661_v52 = vmul.f32 0.7978846, %v613_v37  ;;  %v2023_v58 = vadd.f32 %v1517_v54, %v1878_v10  ;;  %v2027_v59 = vadd.f32 %v1958_v25, %v1880_v11 }
 0x124   :  { %v798_v56 = vmul.f32 0.5, %v750_v43  ;;  %v668_v57 = vmul.f32 0.7978846, %v620_v47  ;;  %1638 = vtanh.f32 %v660_v16  ;;  %v567_v61 = vmul.f32 0.044715, %v519_v53  ;;  %v2065_v30 = vpop.f32.mrf.mxu0  ;;  %v1521_v16 = vpop.f32.mrf.mxu1 }
 0x125   :  { %2493 = vst [vmem:[#allocation13_spill] sm:$0xff] %v2023_v58  ;;  %v806_v60 = vmul.f32 0.5, %v758_v14  ;;  %v2030_v63 = vadd.f32 %v428_v18, %v1878_v10  ;;  %v2034_v0 = vpop.eup %1626  ;;  %1640 = vtanh.f32 %v674_v44  ;;  %v491_v54 = vmul.f32 %v2023_v58, %v2023_v58 }
 0x126   :  { %v2037_v1 = vmul.f32 %v798_v56, %v1905_v28  ;;  %v472_v25 = vmul.f32 %v2027_v59, %v2027_v59  ;;  %1642 = vtanh.f32 %v661_v52  ;;  %v615_v3 = vadd.f32 %v567_v61, %v2002_v17  ;;  %v2093_v61 = vpop.f32.mrf.mxu0 }
 0x127   :  { %v485_v4 = vmul.f32 %v2030_v63, %v2030_v63  ;;  %v2048_v5 = vadd.f32 %v1967_v35, %v1876_v9  ;;  %v2050_v28 = vpop.eup %1628  ;;  %1644 = vtanh.f32 %v668_v57  ;;  %v539_v8 = vmul.f32 %v491_v54, %v2023_v58 }
 0x128   :  { %v520_v12 = vmul.f32 %v472_v25, %v2027_v59  ;;  %v2055_v13 = vadd.f32 %v1518_v48, %v1878_v10  ;;  %v2060_v26 = vmul.f32 %v806_v60, %v1908_v29  ;;  %v2071_v34 = vadd.f32 %v1979_v46, %v1880_v11 }
 0x129   :  { %2494 = vst [vmem:[#allocation14_spill] sm:$0xff] %v2048_v5  ;;  %v533_v27 = vmul.f32 %v485_v4, %v2030_v63  ;;  %v474_v35 = vmul.f32 %v2048_v5, %v2048_v5  ;;  %v587_v31 = vmul.f32 0.044715, %v539_v8  ;;  %v663_v37 = vmul.f32 0.7978846, %v615_v3  ;;  %v444_v8 = vpop.f32.mrf.mxu1 }
 0x12a   :  { %2495 = vst [vmem:[#allocation15_spill] sm:$0xff] %v2055_v13  ;;  %v568_v32 = vmul.f32 0.044715, %v520_v12  ;;  %v494_v33 = vmul.f32 %v2055_v13, %v2055_v13  ;;  %v2075_v43 = vadd.f32 %v431_v2, %v1878_v10  ;;  %v475_v46 = vmul.f32 %v2071_v34, %v2071_v34 }
 0x12b   :  { %v581_v29 = vmul.f32 0.044715, %v533_v27  ;;  %v522_v42 = vmul.f32 %v474_v35, %v2048_v5  ;;  %v2077_v44 = vpop.eup %1630  ;;  %v635_v47 = vadd.f32 %v587_v31, %v2023_v58  ;;  %v2091_v60 = vadd.f32 %v1989_v55, %v1876_v9 }
 0x12c   :  { %2496 = vst [vmem:[#allocation16_spill] sm:$0xff] %v2075_v43  ;;  %v616_v48 = vadd.f32 %v568_v32, %v2027_v59  ;;  %v542_v14 = vmul.f32 %v494_v33, %v2055_v13  ;;  %v2084_v52 = vpop.eup %1632  ;;  %v488_v57 = vmul.f32 %v2075_v43, %v2075_v43  ;;  %v523_v4 = vmul.f32 %v475_v46, %v2071_v34 }
 0x12d   :  { %v629_v53 = vadd.f32 %v581_v29, %v2030_v63  ;;  %v570_v56 = vmul.f32 0.044715, %v522_v42  ;;  %2497 = vst [vmem:[#allocation17_spill] sm:$0xff] %v2091_v60  ;;  %v2095_v54 = vpop.eup %1634  ;;  %v683_v25 = vmul.f32 0.7978846, %v635_v47  ;;  %v477_v55 = vmul.f32 %v2091_v60, %v2091_v60 }
 0x12e   :  { %v664_v2 = vmul.f32 0.7978846, %v616_v48  ;;  %v590_v3 = vmul.f32 0.044715, %v542_v14  ;;  %v2098_v12 = vpop.eup %1636  ;;  %v536_v31 = vmul.f32 %v488_v57, %v2075_v43  ;;  %1646 = vtanh.f32 %v663_v37  ;;  %v2109_v14 = vpop.f32.mrf.mxu0 }
 0x12f   :  { %v677_v27 = vmul.f32 0.7978846, %v629_v53  ;;  %v618_v35 = vadd.f32 %v570_v56, %v2048_v5  ;;  %v571_v33 = vmul.f32 0.044715, %v523_v4  ;;  %v2106_v29 = vadd.f32 %v1521_v16, %v1878_v10  ;;  %v1522_v57 = vpop.f32.mrf.mxu1 }
 0x130   :  { %v638_v32 = vadd.f32 %v590_v3, %v2055_v13  ;;  %1648 = vtanh.f32 %v683_v25  ;;  %v584_v47 = vmul.f32 0.044715, %v536_v31  ;;  %v525_v48 = vmul.f32 %v477_v55, %v2091_v60 }
 0x131   :  { %2498 = vst [vmem:[#allocation18_spill] sm:$0xff] %v2106_v29  ;;  %v666_v42 = vmul.f32 0.7978846, %v618_v35  ;;  %v2111_v46 = vpop.eup %1638  ;;  %1650 = vtanh.f32 %v664_v2  ;;  %v619_v56 = vadd.f32 %v571_v33, %v2071_v34  ;;  %v503_v37 = vmul.f32 %v2106_v29, %v2106_v29 }
 0x132   :  { %v686_v53 = vmul.f32 0.7978846, %v638_v32  ;;  %v2116_v3 = vpop.eup %1640  ;;  %1652 = vtanh.f32 %v677_v27  ;;  %v632_v16 = vadd.f32 %v584_v47, %v2075_v43  ;;  %v573_v25 = vmul.f32 0.044715, %v525_v48  ;;  %v329_v48 = vpop.f32.mrf.mxu0 }
 0x133   :  { %v2121_v4 = vadd.f32 %v1999_v7, %v1880_v11  ;;  %v2123_v35 = vpop.eup %1642  ;;  %1654 = vtanh.f32 %v666_v42  ;;  %v667_v2 = vmul.f32 0.7978846, %v619_v56  ;;  %v551_v31 = vmul.f32 %v503_v37, %v2106_v29  ;;  %v447_v37 = vpop.f32.mrf.mxu1 }
 0x134   :  { %v2127_v55 = vadd.f32 %v444_v8, %v1878_v10  ;;  %v2129_v32 = vpop.eup %1644  ;;  %v680_v33 = vmul.f32 0.7978846, %v632_v16  ;;  %v621_v27 = vadd.f32 %v573_v25, %v2091_v60  ;;  %v2136_v7 = vadd.f32 %v2013_v40, %v1876_v9 }
 0x135   :  { %2499 = vst [vmem:[#allocation19_spill] sm:$0xff] %v2121_v4  ;;  %v478_v47 = vmul.f32 %v2121_v4, %v2121_v4  ;;  %1656 = vtanh.f32 %v686_v53  ;;  %v599_v42 = vmul.f32 0.044715, %v551_v31  ;;  %v2141_v8 = vadd.f32 %v1522_v57, %v1878_v10 }
 0x136   :  { %2500 = vst [vmem:[#allocation20_spill] sm:$0xff] %v2127_v55  ;;  %2501 = vst [vmem:[#allocation21_spill] sm:$0xff] %v2136_v7  ;;  %v497_v56 = vmul.f32 %v2127_v55, %v2127_v55  ;;  %1658 = vtanh.f32 %v667_v2  ;;  %v669_v16 = vmul.f32 0.7978846, %v621_v27  ;;  %v480_v18 = vmul.f32 %v2136_v7, %v2136_v7 }
 0x137   :  { %2502 = vst [vmem:[#allocation22_spill] sm:$0xff] %v2141_v8  ;;  %v526_v25 = vmul.f32 %v478_v47, %v2121_v4  ;;  %v647_v40 = vadd.f32 %v599_v42, %v2106_v29  ;;  %v506_v53 = vmul.f32 %v2141_v8, %v2141_v8  ;;  %v2152_v31 = vadd.f32 %v2032_v15, %v1880_v11  ;;  %v333_v47 = vpop.f32.mrf.mxu0 }
 0x138   :  { %v545_v60 = vmul.f32 %v497_v56, %v2127_v55  ;;  %1660 = vtanh.f32 %v680_v33  ;;  %v528_v2 = vmul.f32 %v480_v18, %v2136_v7  ;;  %v2156_v27 = vadd.f32 %v447_v37, %v1878_v10 }
 0x139   :  { %2503 = vst [vmem:[#allocation23_spill] sm:$0xff] %v2152_v31  ;;  %v574_v57 = vmul.f32 0.044715, %v526_v25  ;;  %v695_v13 = vmul.f32 0.7978846, %v647_v40  ;;  %v554_v42 = vmul.f32 %v506_v53, %v2141_v8  ;;  %v481_v56 = vmul.f32 %v2152_v31, %v2152_v31 }
 0x13a   :  { %2504 = vst [vmem:[#allocation24_spill] sm:$0xff] %v2156_v27  ;;  %v593_v58 = vmul.f32 0.044715, %v545_v60  ;;  %v576_v5 = vmul.f32 0.044715, %v528_v2  ;;  %v500_v15 = vmul.f32 %v2156_v27, %v2156_v27  ;;  %v2166_v18 = vadd.f32 %v2065_v30, %v1876_v9  ;;  %v2176_v2 = vpop.f32.mrf.mxu0 }
 0x13b   :  { %v622_v29 = vadd.f32 %v574_v57, %v2121_v4  ;;  %1662 = vtanh.f32 %v669_v16  ;;  %v602_v33 = vmul.f32 0.044715, %v554_v42  ;;  %v529_v60 = vmul.f32 %v481_v56, %v2152_v31  ;;  %v2170_v37 = vpop.eup %1646 }
 0x13c   :  { %2505 = vst [vmem:[#allocation25_spill] sm:$0xff] %v2166_v18  ;;  %v641_v10 = vadd.f32 %v593_v58, %v2127_v55  ;;  %v624_v40 = vadd.f32 %v576_v5, %v2136_v7  ;;  %v548_v53 = vmul.f32 %v500_v15, %v2156_v27  ;;  %v483_v57 = vmul.f32 %v2166_v18, %v2166_v18 }
 0x13d   :  { %v670_v25 = vmul.f32 0.7978846, %v622_v29  ;;  %v2178_v30 = vpop.eup %1648  ;;  %v650_v58 = vadd.f32 %v602_v33, %v2141_v8  ;;  %v577_v42 = vmul.f32 0.044715, %v529_v60  ;;  %v2183_v56 = vadd.f32 %v2093_v61, %v1880_v11 }
 0x13e   :  { %2506 = vst [vmem:[#allocation26_spill] sm:$0xff] %v2178_v30  ;;  %v689_v16 = vmul.f32 0.7978846, %v641_v10  ;;  %v2185_v29 = vpop.eup %1650  ;;  %1664 = vtanh.f32 %v695_v13  ;;  %v672_v5 = vmul.f32 0.7978846, %v624_v40  ;;  %v531_v7 = vmul.f32 %v483_v57, %v2166_v18  ;;  %v337_v40 = vpop.f32.mrf.mxu0 }
 0x13f   :  { %2507 = vst [vmem:[#allocation27_spill] sm:$0xff] %v2183_v56  ;;  %v596_v15 = vmul.f32 0.044715, %v548_v53  ;;  %v2188_v55 = vpop.eup %1652  ;;  %1666 = vtanh.f32 %v670_v25  ;;  %v698_v4 = vmul.f32 0.7978846, %v650_v58  ;;  %v625_v10 = vadd.f32 %v577_v42, %v2152_v31 }
 0x140   :  { %v484_v33 = vmul.f32 %v2183_v56, %v2183_v56  ;;  %v2193_v60 = vpop.eup %1654  ;;  %1668 = vtanh.f32 %v689_v16  ;;  %v579_v8 = vmul.f32 0.044715, %v531_v7  ;;  %v2198_v13 = vadd.f32 %v2109_v14, %v1876_v9 }
 0x141   :  { %2508 = vst [vmem:[#allocation28_spill] sm:$0xff] %v2193_v60  ;;  %v644_v61 = vadd.f32 %v596_v15, %v2156_v27  ;;  %1670 = vtanh.f32 %v672_v5  ;;  %v673_v53 = vmul.f32 0.7978846, %v625_v10  ;;  %v2202_v57 = vadd.f32 %v329_v48, %v1880_v11 }
 0x142   :  { %v532_v25 = vmul.f32 %v484_v33, %v2183_v56  ;;  %v2204_v58 = vpop.eup %1656  ;;  %1672 = vtanh.f32 %v698_v4  ;;  %v627_v16 = vadd.f32 %v579_v8, %v2166_v18  ;;  %v486_v7 = vmul.f32 %v2198_v13, %v2198_v13 }
 0x143   :  { %2509 = vst [vmem:[#allocation29_spill] sm:$0xff] %v2204_v58  ;;  %v2210_v42 = vadd.f32 %v333_v47, %v1876_v9  ;;  %v2212_v14 = vpop.eup %1658  ;;  %v692_v5 = vmul.f32 0.7978846, %v644_v61  ;;  %v487_v10 = vmul.f32 %v2202_v57, %v2202_v57  ;;  %v748_v48 = vadd.f32 1.0, %v2004_v19  ;;  %v339_v47 = vpop.f32.mrf.mxu0 }
 0x144   :  { %v580_v15 = vmul.f32 0.044715, %v532_v25  ;;  %1674 = vtanh.f32 %v673_v53  ;;  %v534_v8 = vmul.f32 %v486_v7, %v2198_v13  ;;  %v751_v27 = vadd.f32 1.0, %v2034_v0 }
 0x145   :  { %v489_v33 = vmul.f32 %v2210_v42, %v2210_v42  ;;  %v2222_v18 = vpop.eup %1660  ;;  %v535_v25 = vmul.f32 %v487_v10, %v2202_v57  ;;  %v796_v31 = vmul.f32 0.5, %v748_v48  ;;  %v675_v19 = vmul.f32 0.7978846, %v627_v16  ;;  %v343_v0 = vpop.f32.mrf.mxu0 }
 0x146   :  { %v628_v61 = vadd.f32 %v580_v15, %v2183_v56  ;;  %v582_v58 = vmul.f32 0.044715, %v534_v8  ;;  %v749_v53 = vadd.f32 1.0, %v2016_v50  ;;  %1676 = vtanh.f32 %v692_v5 }
 0x147   :  { %v537_v4 = vmul.f32 %v489_v33, %v2210_v42  ;;  %v583_v17 = vmul.f32 0.044715, %v535_v25  ;;  %v799_v30 = vmul.f32 0.5, %v751_v27  ;;  %v752_v10 = vadd.f32 1.0, %v2050_v28 }
 0x148   :  { %v676_v7 = vmul.f32 0.7978846, %v628_v61  ;;  %v2229_v60 = vpop.eup %1662  ;;  %v630_v43 = vadd.f32 %v582_v58, %v2198_v13  ;;  %v797_v56 = vmul.f32 0.5, %v749_v53  ;;  %v844_v48 = vmul.f32 %v796_v31, %v1893_v20 }
 0x149   :  { %v585_v15 = vmul.f32 0.044715, %v537_v4  ;;  %v631_v16 = vadd.f32 %v583_v17, %v2202_v57  ;;  %v847_v8 = vmul.f32 %v799_v30, %v1917_v38  ;;  %v2238_v50 = vadd.f32 %v2176_v2, %v1880_v11 }
 0x14a   :  { %v678_v27 = vmul.f32 0.7978846, %v630_v43  ;;  %v800_v33 = vmul.f32 0.5, %v752_v10  ;;  %v845_v58 = vmul.f32 %v797_v56, %v1896_v21  ;;  %1678 = vtanh.f32 %v675_v19  ;;  %v345_v21 = vpop.f32.mrf.mxu0 }
 0x14b   :  { %v633_v5 = vadd.f32 %v585_v15, %v2210_v42  ;;  %v2242_v4 = vpop.eup %1664  ;;  %v892_v28 = vpack.c.bf16 %v847_v8, %v844_v48  ;;  %v490_v17 = vmul.f32 %v2238_v50, %v2238_v50  ;;  %v2247_v20 = vadd.f32 %v337_v40, %v1876_v9 }
 0x14c   :  { %v2249_v38 = vpop.eup %1666  ;;  %1680 = vtanh.f32 %v676_v7  ;;  %v679_v31 = vmul.f32 0.7978846, %v631_v16  ;;  %v848_v43 = vmul.f32 %v800_v33, %v1920_v39  ;;  %v2253_v2 = vadd.f32 %v339_v47, %v1880_v11 }
 0x14d   :  { %v2255_v30 = vpop.eup %1668  ;;  %1682 = vtanh.f32 %v678_v27  ;;  %1146 = vmatprep.mubr.bf16.mxu1 %v892_v28  ;;  %v538_v56 = vmul.f32 %v490_v17, %v2238_v50  ;;  %v492_v40 = vmul.f32 %v2247_v20, %v2247_v20  ;;  %v2261_v61 = vadd.f32 %v343_v0, %v1876_v9 }
 0x14e   :  { %v2263_v25 = vpop.eup %1670  ;;  %v681_v19 = vmul.f32 0.7978846, %v633_v5  ;;  %v893_v39 = vpack.c.bf16 %v848_v43, %v845_v58  ;;  %v2510_v47 = vpack.c.bf16 %v2037_v1, %v2010_v36  ;;  %v493_v53 = vmul.f32 %v2253_v2, %v2253_v2  ;;  %v347_v5 = vpop.f32.mrf.mxu0 }
 0x14f   :  { %v754_v7 = vadd.f32 1.0, %v2095_v54  ;;  %v2271_v15 = vpop.eup %1672  ;;  %v586_v10 = vmul.f32 0.044715, %v538_v56  ;;  %v540_v16 = vmul.f32 %v492_v40, %v2247_v20  ;;  %v495_v0 = vmul.f32 %v2261_v61, %v2261_v61 }
 0x150   :  { %1147 = vmatmul.mubr.bf16.vlgmr.msra.gmra.mxu1 %v2510_v47  ;;  %v757_v48 = vadd.f32 1.0, %v2123_v35  ;;  %1539 = vmatprep.mubr.bf16.mxu0 %v893_v39  ;;  %v541_v8 = vmul.f32 %v493_v53, %v2253_v2  ;;  %v761_v1 = vadd.f32 1.0, %v2098_v12  ;;  %v764_v27 = vadd.f32 1.0, %v2129_v32 }
 0x151   :  { %v802_v36 = vmul.f32 0.5, %v754_v7  ;;  %v2280_v54 = vpop.eup %1674  ;;  %v634_v33 = vadd.f32 %v586_v10, %v2238_v50  ;;  %v2511_v58 = vpack.c.bf16 %v2060_v26, %v2019_v51  ;;  %v588_v28 = vmul.f32 0.044715, %v540_v16 }
 0x152   :  { %v543_v35 = vmul.f32 %v495_v0, %v2261_v61  ;;  %v805_v17 = vmul.f32 0.5, %v757_v48  ;;  %v589_v43 = vmul.f32 0.044715, %v541_v8  ;;  %v809_v40 = vmul.f32 0.5, %v761_v1 }
 0x153   :  { %1540 = vmatmul.mubr.bf16.vlgmr.msra.gmra.mxu0 %v2511_v58  ;;  %v850_v56 = vmul.f32 %v802_v36, %v1950_v22  ;;  %v812_v12 = vmul.f32 0.5, %v764_v27  ;;  %v682_v39 = vmul.f32 0.7978846, %v634_v33  ;;  %v636_v32 = vadd.f32 %v588_v28, %v2247_v20  ;;  %v2290_v7 = vpop.eup %1676  ;;  %v349_v22 = vpop.f32.mrf.mxu0 }
 0x154   :  { %v591_v47 = vmul.f32 0.044715, %v543_v35  ;;  %v853_v53 = vmul.f32 %v805_v17, %v1977_v45  ;;  %v637_v51 = vadd.f32 %v589_v43, %v2253_v2  ;;  %v857_v26 = vmul.f32 %v809_v40, %v1953_v23 }
 0x155   :  { %v860_v10 = vmul.f32 %v812_v12, %v1985_v49  ;;  %v2296_v16 = vadd.f32 %v345_v21, %v1880_v11  ;;  %1684 = vtanh.f32 %v679_v31  ;;  %v684_v0 = vmul.f32 0.7978846, %v636_v32  ;;  %v353_v58 = vpop.f32.mrf.mxu0 }
 0x156   :  { %v639_v48 = vadd.f32 %v591_v47, %v2261_v61  ;;  %v895_v8 = vpack.c.bf16 %v853_v53, %v850_v56  ;;  %1686 = vtanh.f32 %v681_v19  ;;  %v753_v1 = vadd.f32 1.0, %v2077_v44 }
 0x157   :  { %v899_v36 = vpack.c.bf16 %v860_v10, %v857_v26  ;;  %v496_v45 = vmul.f32 %v2296_v16, %v2296_v16  ;;  %1688 = vtanh.f32 %v682_v39  ;;  %v685_v23 = vmul.f32 0.7978846, %v637_v51  ;;  %v2304_v27 = vpop.eup %1678 }
 0x158   :  { %1154 = vmatprep.mubr.bf16.mxu1 %v895_v8  ;;  %v756_v49 = vadd.f32 1.0, %v2111_v46  ;;  %v767_v21 = vadd.f32 1.0, %v2084_v52  ;;  %1690 = vtanh.f32 %v684_v0  ;;  %v801_v19 = vmul.f32 0.5, %v753_v1 }
 0x159   :  { %1543 = vmatprep.mubr.bf16.mxu0 %v899_v36  ;;  %v544_v31 = vmul.f32 %v496_v45, %v2296_v16  ;;  %v770_v33 = vadd.f32 1.0, %v2116_v3  ;;  %v2308_v28 = vpop.eup %1680  ;;  %v687_v44 = vmul.f32 0.7978846, %v639_v48  ;;  %v2311_v43 = vadd.f32 %v347_v5, %v1876_v9 }
 0x15a   :  { %v804_v35 = vmul.f32 0.5, %v756_v49  ;;  %v815_v17 = vmul.f32 0.5, %v767_v21  ;;  %v2313_v46 = vpop.eup %1682  ;;  %v849_v56 = vmul.f32 %v801_v19, %v1935_v62  ;;  %v2317_v12 = vadd.f32 %v349_v22, %v1880_v11  ;;  %v355_v22 = vpop.f32.mrf.mxu0 }
 0x15b   :  { %v592_v52 = vmul.f32 0.044715, %v544_v31  ;;  %v818_v40 = vmul.f32 0.5, %v770_v33  ;;  %v498_v32 = vmul.f32 %v2311_v43, %v2311_v43  ;;  %v2324_v47 = vadd.f32 %v353_v58, %v1876_v9 }
 0x15c   :  { %v852_v3 = vmul.f32 %v804_v35, %v1956_v24  ;;  %v863_v39 = vmul.f32 %v815_v17, %v1942_v6  ;;  %v499_v62 = vmul.f32 %v2317_v12, %v2317_v12  ;;  %v760_v51 = vadd.f32 1.0, %v2185_v29  ;;  %v357_v58 = vpop.f32.mrf.mxu0 }
 0x15d   :  { %v640_v5 = vadd.f32 %v592_v52, %v2296_v16  ;;  %v866_v53 = vmul.f32 %v818_v40, %v1971_v41  ;;  %v546_v24 = vmul.f32 %v498_v32, %v2311_v43  ;;  %v501_v6 = vmul.f32 %v2324_v47, %v2324_v47 }
 0x15e   :  { %v894_v26 = vpack.c.bf16 %v852_v3, %v849_v56  ;;  %v763_v10 = vadd.f32 1.0, %v2212_v14  ;;  %1692 = vtanh.f32 %v685_v23  ;;  %v547_v48 = vmul.f32 %v499_v62, %v2317_v12 }
 0x15f   :  { %v902_v0 = vpack.c.bf16 %v866_v53, %v863_v39  ;;  %v808_v8 = vmul.f32 0.5, %v760_v51  ;;  %v594_v41 = vmul.f32 0.044715, %v546_v24  ;;  %v549_v36 = vmul.f32 %v501_v6, %v2324_v47  ;;  %v2512_v39 = vld [vmem:[#allocation16_spill] sm:$0xff]  ;;  %v359_v6 = vpop.f32.mrf.mxu0 }
 0x160   :  { %1155 = vmatmul.mubr.bf16.gmra.mxu1 %v894_v26  ;;  %v811_v45 = vmul.f32 0.5, %v763_v10  ;;  %v773_v29 = vadd.f32 1.0, %v2188_v55  ;;  %v688_v1 = vmul.f32 0.7978846, %v640_v5  ;;  %v595_v49 = vmul.f32 0.044715, %v547_v48 }
 0x161   :  { %1544 = vmatmul.mubr.bf16.gmra.mxu0 %v902_v0  ;;  %v856_v21 = vmul.f32 %v808_v8, %v2027_v59  ;;  %v776_v14 = vadd.f32 1.0, %v2222_v18  ;;  %v642_v23 = vadd.f32 %v594_v41, %v2311_v43  ;;  %v597_v31 = vmul.f32 0.044715, %v549_v36  ;;  %v2513_v53 = vld [vmem:[#allocation28_spill] sm:$0xff]  ;;  %v2516_v41 = vld [vmem:[#allocation29_spill] sm:$0xff] }
 0x162   :  { %v859_v19 = vmul.f32 %v811_v45, %v2071_v34  ;;  %v821_v33 = vmul.f32 0.5, %v773_v29  ;;  %v2342_v35 = vpop.eup %1684  ;;  %v643_v17 = vadd.f32 %v595_v49, %v2317_v12  ;;  %v2346_v55 = vadd.f32 %v355_v22, %v1880_v11  ;;  %v2515_v48 = vld [vmem:[#allocation12_spill] sm:$0xff] }
 0x163   :  { %v824_v52 = vmul.f32 0.5, %v776_v14  ;;  %v759_v56 = vadd.f32 1.0, %v2170_v37  ;;  %v2349_v59 = vpop.eup %1686  ;;  %1694 = vtanh.f32 %v687_v44  ;;  %v762_v62 = vadd.f32 1.0, %v2513_v53  ;;  %v2514_v44 = vld [vmem:[#allocation26_spill] sm:$0xff] }
 0x164   :  { %v898_v18 = vpack.c.bf16 %v859_v19, %v856_v21  ;;  %v869_v40 = vmul.f32 %v821_v33, %v2030_v63  ;;  %v2352_v3 = vpop.eup %1688  ;;  %v691_v34 = vmul.f32 0.7978846, %v643_v17  ;;  %v502_v5 = vmul.f32 %v2346_v55, %v2346_v55 }
 0x165   :  { %v872_v32 = vmul.f32 %v824_v52, %v2512_v39  ;;  %v2358_v51 = vpop.eup %1690  ;;  %1696 = vtanh.f32 %v688_v1  ;;  %v690_v37 = vmul.f32 0.7978846, %v642_v23  ;;  %v807_v26 = vmul.f32 0.5, %v759_v56  ;;  %v2517_v1 = vld [vmem:[#allocation14_spill] sm:$0xff] }
 0x166   :  { %1162 = vmatprep.mubr.bf16.mxu1 %v898_v18  ;;  %v779_v24 = vadd.f32 1.0, %v2514_v44  ;;  %v2362_v63 = vadd.f32 %v597_v31, %v2324_v47  ;;  %v550_v22 = vmul.f32 %v502_v5, %v2346_v55  ;;  %v810_v0 = vmul.f32 0.5, %v762_v62  ;;  %v2518_v31 = vld [vmem:[#allocation13_spill] sm:$0xff] }
 0x167   :  { %v905_v10 = vpack.c.bf16 %v872_v32, %v869_v40  ;;  %1698 = vtanh.f32 %v691_v34  ;;  %v855_v8 = vmul.f32 %v807_v26, %v2515_v48  ;;  %v782_v36 = vadd.f32 1.0, %v2516_v41  ;;  %v2519_v40 = vld [vmem:[#allocation15_spill] sm:$0xff] }
 0x168   :  { %v827_v45 = vmul.f32 0.5, %v779_v24  ;;  %v598_v29 = vmul.f32 0.044715, %v550_v22  ;;  %v858_v49 = vmul.f32 %v810_v0, %v2517_v1  ;;  %v2369_v21 = vadd.f32 %v357_v58, %v1876_v9  ;;  %v2520_v26 = vld [vmem:[#allocation19_spill] sm:$0xff] }
 0x169   :  { %1547 = vmatprep.mubr.bf16.mxu0 %v905_v10  ;;  %v2372_v14 = vadd.f32 %v359_v6, %v1880_v11  ;;  %v830_v23 = vmul.f32 0.5, %v782_v36  ;;  %v766_v33 = vadd.f32 1.0, %v2249_v38  ;;  %v769_v17 = vadd.f32 1.0, %v2280_v54  ;;  %v2521_v24 = vld [vmem:[#allocation23_spill] sm:$0xff] }
 0x16a   :  { %v875_v19 = vmul.f32 %v827_v45, %v2518_v31  ;;  %v646_v52 = vadd.f32 %v598_v29, %v2346_v55  ;;  %v897_v56 = vpack.c.bf16 %v858_v49, %v855_v8  ;;  %v504_v18 = vmul.f32 %v2369_v21, %v2369_v21  ;;  %v2522_v8 = vld [vmem:[#allocation20_spill] sm:$0xff] }
 0x16b   :  { %v505_v9 = vmul.f32 %v2372_v14, %v2372_v14  ;;  %v1693_v58 = vpop.eup %1692  ;;  %v878_v11 = vmul.f32 %v830_v23, %v2519_v40  ;;  %v814_v34 = vmul.f32 0.5, %v766_v33  ;;  %v817_v39 = vmul.f32 0.5, %v769_v17  ;;  %v2523_v49 = vld [vmem:[#allocation24_spill] sm:$0xff]  ;;  %v2525_v40 = vld [vmem:[#allocation21_spill] sm:$0xff] }
 0x16c   :  { %v785_v32 = vadd.f32 1.0, %v2255_v30  ;;  %v694_v5 = vmul.f32 0.7978846, %v646_v52  ;;  %1163 = vmatmul.mubr.bf16.gmra.mxu1 %v897_v56  ;;  %v552_v38 = vmul.f32 %v504_v18, %v2369_v21  ;;  %v788_v53 = vadd.f32 1.0, %v2290_v7  ;;  %v2524_v18 = vld [vmem:[#allocation17_spill] sm:$0xff] }
 0x16d   :  { %v553_v54 = vmul.f32 %v505_v9, %v2372_v14  ;;  %v908_v62 = vpack.c.bf16 %v878_v11, %v875_v19  ;;  %v862_v44 = vmul.f32 %v814_v34, %v2520_v26  ;;  %v865_v6 = vmul.f32 %v817_v39, %v2521_v24  ;;  %v2528_v24 = vld [vmem:[#allocation27_spill] sm:$0xff] }
 0x16e   :  { %v833_v10 = vmul.f32 0.5, %v785_v32  ;;  %1700 = vtanh.f32 %v690_v37  ;;  %v600_v22 = vmul.f32 0.044715, %v552_v38  ;;  %v836_v48 = vmul.f32 0.5, %v788_v53  ;;  %v2526_v38 = vld [vmem:[#allocation18_spill] sm:$0xff] }
 0x16f   :  { %v601_v0 = vmul.f32 0.044715, %v553_v54  ;;  %1548 = vmatmul.mubr.bf16.gmra.mxu0 %v908_v62  ;;  %v901_v30 = vpack.c.bf16 %v865_v6, %v862_v44  ;;  %v765_v36 = vadd.f32 1.0, %v2229_v60  ;;  %v768_v45 = vadd.f32 1.0, %v2263_v25  ;;  %v2527_v53 = vld [vmem:[#allocation22_spill] sm:$0xff] }
 0x170   :  { %v881_v41 = vmul.f32 %v833_v10, %v2522_v8  ;;  %v2392_v29 = vpop.eup %1694  ;;  %v648_v7 = vadd.f32 %v600_v22, %v2369_v21  ;;  %v884_v23 = vmul.f32 %v836_v48, %v2523_v49  ;;  %v791_v37 = vadd.f32 1.0, %v2242_v4 }
 0x171   :  { %v649_v1 = vadd.f32 %v601_v0, %v2372_v14  ;;  %1170 = vmatprep.mubr.bf16.mxu1 %v901_v30  ;;  %v813_v31 = vmul.f32 0.5, %v765_v36  ;;  %v816_v19 = vmul.f32 0.5, %v768_v45  ;;  %v794_v33 = vadd.f32 1.0, %v2271_v15 }
 0x172   :  { %v772_v17 = vadd.f32 1.0, %v2308_v28  ;;  %v1697_v60 = vpop.eup %1696  ;;  %1702 = vtanh.f32 %v694_v5  ;;  %v911_v52 = vpack.c.bf16 %v884_v23, %v881_v41  ;;  %v839_v56 = vmul.f32 0.5, %v791_v37 }
 0x173   :  { %v697_v25 = vmul.f32 0.7978846, %v649_v1  ;;  %v861_v9 = vmul.f32 %v813_v31, %v2524_v18  ;;  %v864_v11 = vmul.f32 %v816_v19, %v2525_v40  ;;  %v842_v34 = vmul.f32 0.5, %v794_v33  ;;  %v2529_v1 = vld [vmem:[#allocation25_spill] sm:$0xff] }
 0x174   :  { %v775_v39 = vadd.f32 1.0, %v2342_v35  ;;  %v1699_v4 = vpop.eup %1698  ;;  %v696_v32 = vmul.f32 0.7978846, %v648_v7  ;;  %1551 = vmatprep.mubr.bf16.mxu0 %v911_v52  ;;  %v887_v54 = vmul.f32 %v839_v56, %v2526_v38  ;;  %v820_v15 = vmul.f32 0.5, %v772_v17 }
 0x175   :  { %v771_v28 = vadd.f32 1.0, %v2304_v27  ;;  %1704 = vtanh.f32 %v697_v25  ;;  %v900_v5 = vpack.c.bf16 %v864_v11, %v861_v9  ;;  %v890_v62 = vmul.f32 %v842_v34, %v2527_v53 }
 0x176   :  { %v823_v26 = vmul.f32 0.5, %v775_v39  ;;  %v693_v44 = vmul.f32 0.7978846, %v2362_v63  ;;  %v868_v6 = vmul.f32 %v820_v15, %v2528_v24  ;;  %v774_v10 = vadd.f32 1.0, %v2313_v46 }
 0x177   :  { %v778_v35 = vadd.f32 1.0, %v2352_v3  ;;  %1171 = vmatmul.mubr.bf16.gmra.mxu1 %v900_v5  ;;  %v914_v22 = vpack.c.bf16 %v890_v62, %v887_v54  ;;  %v819_v48 = vmul.f32 0.5, %v771_v28  ;;  %v781_v30 = vadd.f32 1.0, %v1693_v58 }
 0x178   :  { %v871_v0 = vmul.f32 %v823_v26, %v2202_v57  ;;  %v822_v27 = vmul.f32 0.5, %v774_v10  ;;  %1706 = vtanh.f32 %v696_v32  ;;  %v780_v63 = vadd.f32 1.0, %v2358_v51 }
 0x179   :  { %v826_v8 = vmul.f32 0.5, %v778_v35  ;;  %1552 = vmatmul.mubr.bf16.gmra.mxu0 %v914_v22  ;;  %v829_v36 = vmul.f32 0.5, %v781_v30  ;;  %1708 = vtanh.f32 %v693_v44  ;;  %v784_v46 = vadd.f32 1.0, %v1697_v60 }
 0x17a   :  { %v904_v41 = vpack.c.bf16 %v871_v0, %v868_v6  ;;  %v870_v45 = vmul.f32 %v822_v27, %v2198_v13  ;;  %v787_v7 = vadd.f32 1.0, %v1699_v4  ;;  %v867_v49 = vmul.f32 %v819_v48, %v2529_v1 }
 0x17b   :  { %v1701_v3 = vpop.eup %1700  ;;  %v874_v57 = vmul.f32 %v826_v8, %v2238_v50  ;;  %v877_v58 = vmul.f32 %v829_v36, %v2253_v2  ;;  %v777_v23 = vadd.f32 1.0, %v2349_v59  ;;  %v828_v33 = vmul.f32 0.5, %v780_v63 }
 0x17c   :  { %1178 = vmatprep.mubr.bf16.mxu1 %v904_v41  ;;  %v835_v37 = vmul.f32 0.5, %v787_v7  ;;  %v903_v31 = vpack.c.bf16 %v870_v45, %v867_v49  ;;  %v832_v51 = vmul.f32 0.5, %v784_v46  ;;  %v786_v52 = vadd.f32 1.0, %v1701_v3 }
 0x17d   :  { %v907_v19 = vpack.c.bf16 %v877_v58, %v874_v57  ;;  %v825_v13 = vmul.f32 0.5, %v777_v23  ;;  %v876_v25 = vmul.f32 %v828_v33, %v2247_v20  ;;  %v783_v18 = vadd.f32 1.0, %v2392_v29 }
 0x17e   :  { %v883_v60 = vmul.f32 %v835_v37, %v2317_v12  ;;  %v880_v50 = vmul.f32 %v832_v51, %v2296_v16  ;;  %v834_v34 = vmul.f32 0.5, %v786_v52 }
 0x17f   :  { %v1703_v17 = vpop.eup %1702  ;;  %1179 = vmatmul.mubr.bf16.gmra.mxu1 %v903_v31  ;;  %v873_v59 = vmul.f32 %v825_v13, %v2210_v42  ;;  %v831_v12 = vmul.f32 0.5, %v783_v18 }
 0x180   :  { %1186 = vmatprep.mubr.bf16.mxu1 %v907_v19  ;;  %v790_v2 = vadd.f32 1.0, %v1703_v17  ;;  %v910_v40 = vpack.c.bf16 %v883_v60, %v880_v50  ;;  %v882_v16 = vmul.f32 %v834_v34, %v2311_v43 }
 0x181   :  { %v906_v11 = vpack.c.bf16 %v876_v25, %v873_v59  ;;  %v879_v29 = vmul.f32 %v831_v12, %v2261_v61 }
 0x182   :  { %v1705_v56 = vpop.eup %1704  ;;  %v838_v32 = vmul.f32 0.5, %v790_v2 }
 0x183   :  { %v793_v9 = vadd.f32 1.0, %v1705_v56  ;;  %v909_v5 = vpack.c.bf16 %v882_v16, %v879_v29 }
 0x184   :  { %v886_v42 = vmul.f32 %v838_v32, %v2346_v55  ;;  %v2431_v55 = vld [vmem:[%s2475_s4] ss:$0 sm:$0xff]  ;;  %s1806_s4 = smov [#allocation8]  }
 0x185   :  { %v841_v39 = vmul.f32 0.5, %v793_v9  ;;  %v1707_v4 = vpop.eup %1706  ;;  %s1329_s14 = sshll.u32 %s1806_s4, 4  ;;  %s1330_s14 = int_to_ptr.vmem [resolvable:$true] %s1329_s14 }
 0x186   :  { %v1709_v38 = vpop.eup %1708  ;;  %v792_v54 = vadd.f32 1.0, %v1707_v4  ;;  %s1770_s15 = scalar_lea.vmem %s1330_s14, 2048  ;;  %p1775_p2 = scmp.lt.s32.totalorder %s1330_s14, %s1330_s14 }
 0x187   :  { %1187 = vmatmul.mubr.bf16.gmra.mxu1 %v906_v11  ;;  %v889_v20 = vmul.f32 %v841_v39, %v2372_v14  ;;  %v789_v15 = vadd.f32 1.0, %v1709_v38  ;;  %p1771_p1 = scmp.ne.s32.totalorder %s1330_s14, %s1770_s15  ;;  %p1776_p3 = scmp.lt.s32.totalorder %s1770_s15, %s1770_s15 }
 0x188   :  { %1194 = vmatprep.mubr.bf16.mxu1 %v910_v40  ;;  %v840_v53 = vmul.f32 0.5, %v792_v54 }
 0x189   :  { %v913_v28 = vpack.c.bf16 %v889_v20, %v886_v42  ;;  %v837_v62 = vmul.f32 0.5, %v789_v15  ;;  %p1777_p4 = por %p1776_p3, %p1775_p2 }
 0x18a   :  { %v888_v26 = vmul.f32 %v840_v53, %v2369_v21 }
 0x18b   :  { %v885_v44 = vmul.f32 %v837_v62, %v2324_v47  ;;  %p1778_p5 = pnand %p1777_p4, %p1771_p1 }
 0x18d   :  { %v912_v24 = vpack.c.bf16 %v888_v26, %v885_v44 }
 0x18f   :  { %1195 = vmatmul.mubr.bf16.gmra.mxu1 %v909_v5 }
 0x190   :  { %1202 = vmatprep.mubr.bf16.mxu1 %v913_v28 }
 0x197   :  { %1203 = vmatmul.mubr.bf16.gmra.mxu1 %v912_v24 }
 0x210   :  { %v1431_v14 = vpop.f32.mrf.mxu1 }
 0x212   :  { %v1432_v43 = vpop.f32.mrf.mxu1 }
 0x213   :  { %v1541_v61 = vpop.f32.mrf.mxu0  ;;  %v1433_v6 = vadd.f32 %v1432_v43, %v1431_v14 }
 0x214   :  { %v1434_v10 = vpop.f32.mrf.mxu1 }
 0x215   :  { %v1149_v35 = vadd.f32 %v1433_v6, %v2431_v55  ;;  %v1245_v22 = vpop.f32.mrf.mxu0 }
 0x216   :  { %v1435_v0 = vpop.f32.mrf.mxu1 }
 0x217   :  { %v1246_v48 = vadd.f32 %v1245_v22, %v1149_v35  ;;  %v1542_v21 = vpop.f32.mrf.mxu0  ;;  %v1436_v30 = vadd.f32 %v1435_v0, %v1434_v10 }
 0x219   :  { %1308 = vst.msk [vmem:[#allocation8] sm:$0xff] %vm224_vm0, %v1246_v48  ;;  %v1152_v47 = vadd.f32 %v1436_v30, %v2431_v55  ;;  %v1248_v27 = vpop.f32.mrf.mxu0 }
 0x21b   :  { %v1249_v8 = vadd.f32 %v1248_v27, %v1152_v47 }
 0x21d   :  { %1309 = vst.msk [vmem:[#allocation8 + $0x8] sm:$0xff] %vm224_vm0, %v1249_v8 }
 0x220   :  { %v1437_v41 = vpop.f32.mrf.mxu1 }
 0x221   :  { %v1545_v57 = vpop.f32.mrf.mxu0 }
 0x222   :  { %v1438_v36 = vpop.f32.mrf.mxu1 }
 0x223   :  { %v1439_v63 = vadd.f32 %v1438_v36, %v1437_v41  ;;  %v1261_v37 = vpop.f32.mrf.mxu0 }
 0x224   :  { %v1440_v45 = vpop.f32.mrf.mxu1 }
 0x225   :  { %v1157_v46 = vadd.f32 %v1439_v63, %v2431_v55  ;;  %v1546_v17 = vpop.f32.mrf.mxu0 }
 0x226   :  { %v1441_v7 = vpop.f32.mrf.mxu1 }
 0x227   :  { %v1254_v3 = vadd.f32 %v1541_v61, %v1157_v46  ;;  %v1442_v1 = vadd.f32 %v1441_v7, %v1440_v45  ;;  %v1264_v56 = vpop.f32.mrf.mxu0 }
 0x229   :  { %1310 = vst.msk [vmem:[#allocation8 + $0x10] sm:$0xff] %vm224_vm0, %v1254_v3  ;;  %v1160_v49 = vadd.f32 %v1442_v1, %v2431_v55 }
 0x22b   :  { %v1257_v58 = vadd.f32 %v1542_v21, %v1160_v49 }
 0x22c   :  { %v1443_v23 = vpop.f32.mrf.mxu1 }
 0x22d   :  { %1311 = vst.msk [vmem:[#allocation8 + $0x18] sm:$0xff] %vm224_vm0, %v1257_v58 }
 0x22e   :  { %v1444_v31 = vpop.f32.mrf.mxu1 }
 0x22f   :  { %v1445_v19 = vadd.f32 %v1444_v31, %v1443_v23  ;;  %v1549_v11 = vpop.f32.mrf.mxu0 }
 0x230   :  { %v1446_v33 = vpop.f32.mrf.mxu1 }
 0x231   :  { %v1165_v51 = vadd.f32 %v1445_v19, %v2431_v55  ;;  %v1277_v12 = vpop.f32.mrf.mxu0 }
 0x232   :  { %v1447_v13 = vpop.f32.mrf.mxu1 }
 0x233   :  { %v1262_v60 = vadd.f32 %v1261_v37, %v1165_v51  ;;  %v1448_v25 = vadd.f32 %v1447_v13, %v1446_v33  ;;  %v1550_v15 = vpop.f32.mrf.mxu0 }
 0x235   :  { %1312 = vst.msk [vmem:[#allocation8 + $0x20] sm:$0xff] %vm224_vm0, %v1262_v60  ;;  %v1168_v52 = vadd.f32 %v1448_v25, %v2431_v55  ;;  %v1280_v44 = vpop.f32.mrf.mxu0 }
 0x237   :  { %v1265_v50 = vadd.f32 %v1264_v56, %v1168_v52  ;;  %v1449_v2 = vpop.f32.mrf.mxu1 }
 0x239   :  { %1313 = vst.msk [vmem:[#allocation8 + $0x28] sm:$0xff] %vm224_vm0, %v1265_v50  ;;  %v1450_v59 = vpop.f32.mrf.mxu1  ;;  %v1553_v10 = vpop.f32.mrf.mxu0 }
 0x23a   :  { %v1451_v18 = vadd.f32 %v1450_v59, %v1449_v2 }
 0x23b   :  { %v1452_v9 = vpop.f32.mrf.mxu1  ;;  %v1293_v30 = vpop.f32.mrf.mxu0 }
 0x23c   :  { %v1173_v40 = vadd.f32 %v1451_v18, %v2431_v55 }
 0x23d   :  { %v1453_v34 = vpop.f32.mrf.mxu1  ;;  %v1554_v63 = vpop.f32.mrf.mxu0 }
 0x23e   :  { %v1270_v39 = vadd.f32 %v1545_v57, %v1173_v40  ;;  %v1454_v4 = vadd.f32 %v1453_v34, %v1452_v9 }
 0x23f   :  { %v1455_v32 = vpop.f32.mrf.mxu1  ;;  %v1296_v49 = vpop.f32.mrf.mxu0 }
 0x240   :  { %1314 = vst.msk [vmem:[#allocation8 + $0x30] sm:$0xff] %vm224_vm0, %v1270_v39  ;;  %v1176_v38 = vadd.f32 %v1454_v4, %v2431_v55 }
 0x241   :  { %v1456_v20 = vpop.f32.mrf.mxu1 }
 0x242   :  { %v1273_v16 = vadd.f32 %v1546_v17, %v1176_v38  ;;  %v1457_v54 = vadd.f32 %v1456_v20, %v1455_v32 }
 0x243   :  { %v1458_v42 = vpop.f32.mrf.mxu1 }
 0x244   :  { %1315 = vst.msk [vmem:[#allocation8 + $0x38] sm:$0xff] %vm224_vm0, %v1273_v16  ;;  %v1181_v29 = vadd.f32 %v1457_v54, %v2431_v55 }
 0x245   :  { %v1459_v28 = vpop.f32.mrf.mxu1 }
 0x246   :  { %v1278_v5 = vadd.f32 %v1277_v12, %v1181_v29  ;;  %v1460_v53 = vadd.f32 %v1459_v28, %v1458_v42 }
 0x247   :  { %v1461_v62 = vpop.f32.mrf.mxu1 }
 0x248   :  { %1316 = vst.msk [vmem:[#allocation8 + $0x40] sm:$0xff] %vm224_vm0, %v1278_v5  ;;  %v1184_v26 = vadd.f32 %v1460_v53, %v2431_v55 }
 0x249   :  { %v1462_v24 = vpop.f32.mrf.mxu1 }
 0x24a   :  { %v1281_v14 = vadd.f32 %v1280_v44, %v1184_v26  ;;  %v1463_v43 = vadd.f32 %v1462_v24, %v1461_v62 }
 0x24b   :  { %v1464_v61 = vpop.f32.mrf.mxu1 }
 0x24c   :  { %1317 = vst.msk [vmem:[#allocation8 + $0x48] sm:$0xff] %vm224_vm0, %v1281_v14  ;;  %v1189_v6 = vadd.f32 %v1463_v43, %v2431_v55 }
 0x24d   :  { %v1465_v35 = vpop.f32.mrf.mxu1 }
 0x24e   :  { %v1286_v22 = vadd.f32 %v1549_v11, %v1189_v6  ;;  %v1466_v0 = vadd.f32 %v1465_v35, %v1464_v61 }
 0x24f   :  { %v1467_v48 = vpop.f32.mrf.mxu1 }
 0x250   :  { %1318 = vst.msk [vmem:[#allocation8 + $0x50] sm:$0xff] %vm224_vm0, %v1286_v22  ;;  %v1192_v21 = vadd.f32 %v1466_v0, %v2431_v55 }
 0x251   :  { %v1468_v47 = vpop.f32.mrf.mxu1 }
 0x252   :  { %v1289_v27 = vadd.f32 %v1550_v15, %v1192_v21  ;;  %v1469_v8 = vadd.f32 %v1468_v47, %v1467_v48 }
 0x253   :  { %v1470_v41 = vpop.f32.mrf.mxu1 }
 0x254   :  { %1319 = vst.msk [vmem:[#allocation8 + $0x58] sm:$0xff] %vm224_vm0, %v1289_v27  ;;  %v1197_v36 = vadd.f32 %v1469_v8, %v2431_v55 }
 0x255   :  { %v1471_v45 = vpop.f32.mrf.mxu1 }
 0x256   :  { %v1294_v46 = vadd.f32 %v1293_v30, %v1197_v36  ;;  %v1472_v7 = vadd.f32 %v1471_v45, %v1470_v41 }
 0x257   :  { %v1473_v3 = vpop.f32.mrf.mxu1 }
 0x258   :  { %1320 = vst.msk [vmem:[#allocation8 + $0x60] sm:$0xff] %vm224_vm0, %v1294_v46  ;;  %v1200_v1 = vadd.f32 %v1472_v7, %v2431_v55 }
 0x259   :  { %v1474_v57 = vpop.f32.mrf.mxu1 }
 0x25a   :  { %v1297_v58 = vadd.f32 %v1296_v49, %v1200_v1  ;;  %v1475_v23 = vadd.f32 %v1474_v57, %v1473_v3 }
 0x25b   :  { %v1476_v37 = vpop.f32.mrf.mxu1 }
 0x25c   :  { %1321 = vst.msk [vmem:[#allocation8 + $0x68] sm:$0xff] %vm224_vm0, %v1297_v58  ;;  %v1205_v31 = vadd.f32 %v1475_v23, %v2431_v55 }
 0x25d   :  { %v1477_v19 = vpop.f32.mrf.mxu1 }
 0x25e   :  { %v1302_v33 = vadd.f32 %v1553_v10, %v1205_v31  ;;  %v1478_v51 = vadd.f32 %v1477_v19, %v1476_v37 }
 0x260   :  { %1322 = vst.msk [vmem:[#allocation8 + $0x70] sm:$0xff] %vm224_vm0, %v1302_v33  ;;  %v1208_v17 = vadd.f32 %v1478_v51, %v2431_v55 }
 0x262   :  { %v1305_v13 = vadd.f32 %v1554_v63, %v1208_v17 }
 0x264   :  { %1323 = vst.msk [vmem:[#allocation8 + $0x78] sm:$0xff] %vm224_vm0, %v1305_v13 }
 0x265   :  { %1781 = shalt.err (!%p1778_p5)
}
 0x266   :  { %1335 = dma.vmem_to_hbm [thread:$0]  %s1330_s14, 2048, %s2476_s5, [#allocation4], %s1800_s28, %s1800_s28, %s1801_s29  }
 0x267   :  { %1794 = dma.done.wait [#allocation4], 2048  }
 0x268   :  { %1795 = vsyncadd [#allocation4], 4294965248 }
 0x269   :  { %1339 = vsyncpa [#allocation3], 1 }
 0x26a   :  { %1340 = vsyncpa [#allocation6], 1 }
 0x26b   :  { %1341 = vsyncpa [#allocation4], 1 }

</bundles_post_ra>
